<compile_context>
chip_gen: v5e
topology: v5e:2x2
jax: 0.10.0
libtpu: 0.0.40
codegen_flags: <defaults>
</compile_context>

<pallas_src>
import functools
import math

import jax
import jax.numpy as jnp
from jax.experimental import pallas as pl
from jax.experimental.pallas import tpu as pltpu


# Row tile for the row-parallel (B*S, D) kernels.  Small test shapes fit in a
# single block; for long sequences this amortizes the ~0.35us per-grid-step
# overhead over hundreds of rows while staying well under v7x's 64 MiB VMEM.
_MAX_ROW_TILE = 256


def _row_tile(n_rows: int) -> int:
    return n_rows if n_rows <= _MAX_ROW_TILE else _MAX_ROW_TILE


# ----------------------------------------------------------------------------
# Kernels
# ----------------------------------------------------------------------------
def _embed_pos_kernel(x_ref, w_ref, b_ref, pe_ref, o_ref):
    # x_ref: (1, S, Din), w_ref: (Din, D), b_ref: (1, D), pe_ref: (S, D), o: (1, S, D)
    y = jnp.dot(x_ref[0], w_ref[...], preferred_element_type=jnp.float32)
    o_ref[0] = (y + b_ref[...] + pe_ref[...]).astype(o_ref.dtype)


def _attn_head_kernel(xq_ref, xk_ref, xv_ref, wq_ref, wk_ref, wv_ref, ctx_ref, *, scale):
    # Fused per-(batch, head): projections + scaled dot-product attention.
    q = jnp.dot(xq_ref[0], wq_ref[0], preferred_element_type=jnp.float32)   # [Sq, dk]
    k = jnp.dot(xk_ref[0], wk_ref[0], preferred_element_type=jnp.float32)   # [Sk, dk]
    v = jnp.dot(xv_ref[0], wv_ref[0], preferred_element_type=jnp.float32)   # [Sk, dk]
    s = jax.lax.dot_general(q, k, (((1,), (1,)), ((), ())),
                            preferred_element_type=jnp.float32) * scale     # [Sq, Sk]
    s_max = jnp.max(s, axis=-1, keepdims=True)
    p = jnp.exp(s - s_max)
    attn = p / jnp.sum(p, axis=-1, keepdims=True)
    ctx_ref[0, 0] = jnp.dot(attn, v, preferred_element_type=jnp.float32).astype(ctx_ref.dtype)


def _attn_head_kernel_masked(xq_ref, xk_ref, xv_ref, wq_ref, wk_ref, wv_ref,
                             mask_ref, ctx_ref, *, scale):
    q = jnp.dot(xq_ref[0], wq_ref[0], preferred_element_type=jnp.float32)
    k = jnp.dot(xk_ref[0], wk_ref[0], preferred_element_type=jnp.float32)
    v = jnp.dot(xv_ref[0], wv_ref[0], preferred_element_type=jnp.float32)
    s = jax.lax.dot_general(q, k, (((1,), (1,)), ((), ())),
                            preferred_element_type=jnp.float32) * scale
    s = jnp.where(mask_ref[0] > 0.0, -1e9, s)   # masked_fill_(mask, -1e9)
    s_max = jnp.max(s, axis=-1, keepdims=True)
    p = jnp.exp(s - s_max)
    attn = p / jnp.sum(p, axis=-1, keepdims=True)
    ctx_ref[0, 0] = jnp.dot(attn, v, preferred_element_type=jnp.float32).astype(ctx_ref.dtype)


def _fc_add_ln_kernel(ctx_ref, w_ref, res_ref, o_ref, *, eps):
    y = jnp.dot(ctx_ref[...], w_ref[...], preferred_element_type=jnp.float32) + res_ref[...]
    mu = jnp.mean(y, axis=-1, keepdims=True)
    var = jnp.mean(jnp.square(y - mu), axis=-1, keepdims=True)
    o_ref[...] = ((y - mu) * jax.lax.rsqrt(var + eps)).astype(o_ref.dtype)


def _ffn_ln_kernel(x_ref, w1_ref, w2_ref, o_ref, *, eps):
    x = x_ref[...]
    h = jnp.maximum(jnp.dot(x, w1_ref[...], preferred_element_type=jnp.float32), 0.0)
    y = jnp.dot(h, w2_ref[...], preferred_element_type=jnp.float32) + x
    mu = jnp.mean(y, axis=-1, keepdims=True)
    var = jnp.mean(jnp.square(y - mu), axis=-1, keepdims=True)
    o_ref[...] = ((y - mu) * jax.lax.rsqrt(var + eps)).astype(o_ref.dtype)


# ----------------------------------------------------------------------------
# Wrappers
# ----------------------------------------------------------------------------
def src_emb_pos_encoding(x, w, b, pe):
    """Fused: Linear(input_dim, d_model) + sinusoidal positional-encoding add."""
    B, S, Din = x.shape
    D = w.shape[1]
    return pl.pallas_call(
        _embed_pos_kernel,
        out_shape=jax.ShapeDtypeStruct((B, S, D), jnp.float32),
        grid=(B,),
        in_specs=[
            pl.BlockSpec((1, S, Din), lambda i: (i, 0, 0)),
            pl.BlockSpec((Din, D), lambda i: (0, 0)),
            pl.BlockSpec((1, D), lambda i: (0, 0)),
            pl.BlockSpec((S, D), lambda i: (0, 0)),
        ],
        out_specs=pl.BlockSpec((1, S, D), lambda i: (i, 0, 0)),
        compiler_params=pltpu.CompilerParams(dimension_semantics=("arbitrary",)),
    )(x, w, b.reshape(1, D), pe[:S])


def _scaled_dot_product_heads(x_q, x_kv, wq, wk, wv, attn_mask):
    B, Sq, D = x_q.shape
    Sk = x_kv.shape[1]
    H, _, dk = wq.shape
    scale = 1.0 / math.sqrt(dk)

    in_specs = [
        pl.BlockSpec((1, Sq, D), lambda b, h: (b, 0, 0)),
        pl.BlockSpec((1, Sk, D), lambda b, h: (b, 0, 0)),
        pl.BlockSpec((1, Sk, D), lambda b, h: (b, 0, 0)),
        pl.BlockSpec((1, D, dk), lambda b, h: (h, 0, 0)),
        pl.BlockSpec((1, D, dk), lambda b, h: (h, 0, 0)),
        pl.BlockSpec((1, D, dk), lambda b, h: (h, 0, 0)),
    ]
    args = [x_q, x_kv, x_kv, wq, wk, wv]
    if attn_mask is None:
        kernel = functools.partial(_attn_head_kernel, scale=scale)
    else:
        kernel = functools.partial(_attn_head_kernel_masked, scale=scale)
        in_specs.append(pl.BlockSpec((1, Sq, Sk), lambda b, h: (b, 0, 0)))
        args.append(attn_mask.astype(jnp.float32))

    return pl.pallas_call(
        kernel,
        out_shape=jax.ShapeDtypeStruct((B, H, Sq, dk), jnp.float32),
        grid=(B, H),
        in_specs=in_specs,
        out_specs=pl.BlockSpec((1, 1, Sq, dk), lambda b, h: (b, h, 0, 0)),
        compiler_params=pltpu.CompilerParams(
            dimension_semantics=("parallel", "arbitrary")),
    )(*args)


def _fc_residual_layernorm(ctx_flat, w_fc, res_flat, eps=1e-5):
    R, K = ctx_flat.shape
    D = w_fc.shape[1]
    tr = _row_tile(R)
    return pl.pallas_call(
        functools.partial(_fc_add_ln_kernel, eps=eps),
        out_shape=jax.ShapeDtypeStruct((R, D), jnp.float32),
        grid=(pl.cdiv(R, tr),),
        in_specs=[
            pl.BlockSpec((tr, K), lambda i: (i, 0)),
            pl.BlockSpec((K, D), lambda i: (0, 0)),
            pl.BlockSpec((tr, D), lambda i: (i, 0)),
        ],
        out_specs=pl.BlockSpec((tr, D), lambda i: (i, 0)),
        compiler_params=pltpu.CompilerParams(dimension_semantics=("arbitrary",)),
    )(ctx_flat, w_fc, res_flat)


def multi_head_attention(x_q, x_kv, wq, wk, wv, w_fc, attn_mask=None):
    B, Sq, D = x_q.shape
    H, _, dk = wq.shape
    ctx = _scaled_dot_product_heads(x_q, x_kv, wq, wk, wv, attn_mask)  # [B, H, Sq, dk]
    # Layout plumbing (cheap XLA reshape/transpose); keeps the projection kernel
    # operating on a flat, row-dense [B*Sq, H*dk] slab.
    ctx_flat = ctx.transpose(0, 2, 1, 3).reshape(B * Sq, H * dk)
    res_flat = x_q.reshape(B * Sq, D)
    out = _fc_residual_layernorm(ctx_flat, w_fc, res_flat)
    return out.reshape(B, Sq, D)


def poswise_ffn(x, w1, w2, eps=1e-5):
    B, S, D = x.shape
    F = w1.shape[1]
    R = B * S
    tr = _row_tile(R)
    out = pl.pallas_call(
        functools.partial(_ffn_ln_kernel, eps=eps),
        out_shape=jax.ShapeDtypeStruct((R, D), jnp.float32),
        grid=(pl.cdiv(R, tr),),
        in_specs=[
            pl.BlockSpec((tr, D), lambda i: (i, 0)),
            pl.BlockSpec((D, F), lambda i: (0, 0)),
            pl.BlockSpec((F, D), lambda i: (0, 0)),
        ],
        out_specs=pl.BlockSpec((tr, D), lambda i: (i, 0)),
        compiler_params=pltpu.CompilerParams(dimension_semantics=("arbitrary",)),
    )(x.reshape(R, D), w1, w2)
    return out.reshape(B, S, D)


def decoder_forward(params, dec_inputs, enc_outputs, mask=None):
    """dec_inputs: [B, S, input_dim]; enc_outputs: [B, S_enc, d_model]."""
    x = src_emb_pos_encoding(dec_inputs, params["emb_w"], params["emb_b"], params["pe"])
    for layer in params["layers"]:
        x = multi_head_attention(x, x, layer["self_wq"], layer["self_wk"],
                                 layer["self_wv"], layer["self_fc"], attn_mask=mask)
        x = multi_head_attention(x, enc_outputs, layer["cross_wq"], layer["cross_wk"],
                                 layer["cross_wv"], layer["cross_fc"], attn_mask=None)
        x = poswise_ffn(x, layer["ffn_w1"], layer["ffn_w2"])
    return x


# ----------------------------------------------------------------------------
# Parameters & pure-JAX reference
# ----------------------------------------------------------------------------
def make_pe_table(d_model, max_len):
    position = jnp.arange(max_len, dtype=jnp.float32)[:, None]
    div_term = jnp.exp(jnp.arange(0, d_model, 2, dtype=jnp.float32)
                       * (-math.log(10000.0) / d_model))
    pe = jnp.zeros((max_len, d_model), jnp.float32)
    pe = pe.at[:, 0::2].set(jnp.sin(position * div_term))
    pe = pe.at[:, 1::2].set(jnp.cos(position * div_term))
    return pe


def init_decoder_params(key, input_dim, d_model, n_layers, n_heads, d_ff=1024, max_len=20):
    dk = d_model // n_heads

    def xavier(k, shape, fan_in, fan_out, gain=1.0):
        limit = gain * math.sqrt(6.0 / (fan_in + fan_out))
        return jax.random.uniform(k, shape, jnp.float32, -limit, limit)

    keys = jax.random.split(key, n_layers + 1)
    k_w, k_b = jax.random.split(keys[0])
    params = {
        "emb_w": xavier(k_w, (input_dim, d_model), input_dim, d_model),
        "emb_b": jax.random.uniform(k_b, (d_model,), jnp.float32, -0.1, 0.1),
        "pe": make_pe_table(d_model, max_len),
        "layers": [],
    }
    for l in range(n_layers):
        lk = jax.random.split(keys[l + 1], 10)
        params["layers"].append({
            "self_wq": xavier(lk[0], (n_heads, d_model, dk), d_model, dk, 1.414),
            "self_wk": xavier(lk[1], (n_heads, d_model, dk), d_model, dk, 1.414),
            "self_wv": xavier(lk[2], (n_heads, d_model, dk), d_model, dk, 1.414),
            "self_fc": xavier(lk[3], (n_heads * dk, d_model), n_heads * dk, d_model),
            "cross_wq": xavier(lk[4], (n_heads, d_model, dk), d_model, dk, 1.414),
            "cross_wk": xavier(lk[5], (n_heads, d_model, dk), d_model, dk, 1.414),
            "cross_wv": xavier(lk[6], (n_heads, d_model, dk), d_model, dk, 1.414),
            "cross_fc": xavier(lk[7], (n_heads * dk, d_model), n_heads * dk, d_model),
            "ffn_w1": xavier(lk[8], (d_model, d_ff), d_model, d_ff),
            "ffn_w2": xavier(lk[9], (d_ff, d_model), d_ff, d_model),
        })
    return params


def decoder_reference(params, dec_inputs, enc_outputs, mask=None, eps=1e-5):
    def layer_norm(y):
        mu = y.mean(-1, keepdims=True)
        var = ((y - mu) ** 2).mean(-1, keepdims=True)
        return (y - mu) * jax.lax.rsqrt(var + eps)

    def mha(xq, xkv, wq, wk, wv, wfc, m):
        B, Sq, _ = xq.shape
        H, _, dk = wq.shape
        q = jnp.einsum("bsd,hdk->bhsk", xq, wq)
        k = jnp.einsum("bsd,hdk->bhsk", xkv, wk)
        v = jnp.einsum("bsd,hdk->bhsk", xkv, wv)
        s = jnp.einsum("bhqe,bhke->bhqk", q, k) / math.sqrt(dk)
        if m is not None:
            s = jnp.where(m[:, None].astype(bool), -1e9, s)
        a = jax.nn.softmax(s, axis=-1)
        ctx = jnp.einsum("bhqk,bhke->bhqe", a, v)
        ctx = ctx.transpose(0, 2, 1, 3).reshape(B, Sq, H * dk)
        return layer_norm(ctx @ wfc + xq)

    S = dec_inputs.shape[1]
    x = dec_inputs @ params["emb_w"] + params["emb_b"] + params["pe"][:S][None]
    for layer in params["layers"]:
        x = mha(x, x, layer["self_wq"], layer["self_wk"], layer["self_wv"],
                layer["self_fc"], mask)
        x = mha(x, enc_outputs, layer["cross_wq"], layer["cross_wk"],
                layer["cross_wv"], layer["cross_fc"], None)
        h = jnp.maximum(x @ layer["ffn_w1"], 0.0)
        x = layer_norm(h @ layer["ffn_w2"] + x)
    return x


if __name__ == "__main__":
    B, S, INPUT_DIM, D_MODEL, N_HEADS, N_LAYERS = 2, 8, 16, 32, 4, 2

    key = jax.random.PRNGKey(0)
    k_params, k_dec, k_enc = jax.random.split(key, 3)
    params = init_decoder_params(k_params, INPUT_DIM, D_MODEL, N_LAYERS, N_HEADS)
    dec_inputs = jax.random.normal(k_dec, (B, S, INPUT_DIM), dtype=jnp.float32)
    enc_outputs = jax.random.normal(k_enc, (B, S, D_MODEL), dtype=jnp.float32)

    out = jax.jit(decoder_forward)(params, dec_inputs, enc_outputs)
    out = jax.block_until_ready(out)
    assert out.shape == (B, S, D_MODEL)

    with jax.default_matmul_precision("highest"):
        ref = decoder_reference(params, dec_inputs, enc_outputs)
    err = float(jnp.max(jnp.abs(out - ref)))
    assert err < 5e-2, f"mismatch vs pure-JAX reference (max abs err {err})"

    print("KERNEL_OK")
</pallas_src>

<mosaic_0001>
module attributes {stable_mosaic.version = 11 : i64} {
  func.func @_embed_pos_kernel(%arg0: i32, %arg1: memref<1x8x16xf32, #tpu.memory_space<vmem>>, %arg2: memref<16x32xf32, #tpu.memory_space<vmem>>, %arg3: memref<1x32xf32, #tpu.memory_space<vmem>>, %arg4: memref<8x32xf32, #tpu.memory_space<vmem>>, %arg5: memref<1x8x32xf32, #tpu.memory_space<vmem>>) attributes {dimension_semantics = [#tpu.dimension_semantics<arbitrary>], iteration_bounds = array<i64: 2>, scalar_prefetch = 0 : i64, scratch_operands = 0 : i64, tpu.core_type = #tpu.core_type<tc>, window_params = [{transform_indices = @transform_0, window_bounds = array<i64: 1, 8, 16>}, {pipeline_mode = #tpu.pipeline_mode<synchronous>, transform_indices = @transform_1, window_bounds = array<i64: 16, 32>}, {pipeline_mode = #tpu.pipeline_mode<synchronous>, transform_indices = @transform_2, window_bounds = array<i64: 1, 32>}, {pipeline_mode = #tpu.pipeline_mode<synchronous>, transform_indices = @transform_3, window_bounds = array<i64: 8, 32>}, {transform_indices = @transform_4, window_bounds = array<i64: 1, 8, 32>}]} {
    %c0 = arith.constant 0 : index
    %c0_0 = arith.constant 0 : index
    %c0_1 = arith.constant 0 : index
    %0 = vector.load %arg1[%c0, %c0_0, %c0_1] : memref<1x8x16xf32, #tpu.memory_space<vmem>>, vector<1x8x16xf32>
    %1 = vector.shape_cast %0 : vector<1x8x16xf32> to vector<8x16xf32>
    %c0_2 = arith.constant 0 : index
    %c0_3 = arith.constant 0 : index
    %2 = vector.load %arg2[%c0_2, %c0_3] : memref<16x32xf32, #tpu.memory_space<vmem>>, vector<16x32xf32>
    %cst = arith.constant dense<0.000000e+00> : vector<8x32xf32>
    %3 = tpu.matmul %1, %2, %cst {dimension_numbers = #tpu.dot_dimension_numbers<[1], [0], [0], [1], [0, 0, 1, 1], [], []>} : vector<8x16xf32>, vector<16x32xf32>, vector<8x32xf32> -> vector<8x32xf32>
    %c0_4 = arith.constant 0 : index
    %c0_5 = arith.constant 0 : index
    %4 = vector.load %arg3[%c0_4, %c0_5] : memref<1x32xf32, #tpu.memory_space<vmem>>, vector<1x32xf32>
    %5 = vector.broadcast %4 : vector<1x32xf32> to vector<8x32xf32>
    %6 = arith.addf %3, %5 : vector<8x32xf32>
    %c0_6 = arith.constant 0 : index
    %c0_7 = arith.constant 0 : index
    %7 = vector.load %arg4[%c0_6, %c0_7] : memref<8x32xf32, #tpu.memory_space<vmem>>, vector<8x32xf32>
    %8 = arith.addf %6, %7 : vector<8x32xf32>
    %c0_8 = arith.constant 0 : index
    %c0_9 = arith.constant 0 : index
    %c0_10 = arith.constant 0 : index
    %9 = vector.load %arg5[%c0_8, %c0_9, %c0_10] : memref<1x8x32xf32, #tpu.memory_space<vmem>>, vector<1x8x32xf32>
    %10 = vector.shape_cast %9 : vector<1x8x32xf32> to vector<8x32xf32>
    %11 = vector.shape_cast %8 : vector<8x32xf32> to vector<1x8x32xf32>
    tpu.vector_store %arg5[%c0_8, %c0_9, %c0_10], %11 {strides = array<i32>} : memref<1x8x32xf32, #tpu.memory_space<vmem>>, vector<1x8x32xf32>,
    return
  }
  func.func @transform_0(%arg0: i32) -> (i32, i32, i32) {
    %c0_i32 = arith.constant 0 : i32
    %c0_i32_0 = arith.constant 0 : i32
    %c0_i32_1 = arith.constant 0 : i32
    return %arg0, %c0_i32, %c0_i32_0 : i32, i32, i32
  }
  func.func @transform_1(%arg0: i32) -> (i32, i32) {
    %c0_i32 = arith.constant 0 : i32
    %c0_i32_0 = arith.constant 0 : i32
    %c0_i32_1 = arith.constant 0 : i32
    return %c0_i32, %c0_i32_0 : i32, i32
  }
  func.func @transform_2(%arg0: i32) -> (i32, i32) {
    %c0_i32 = arith.constant 0 : i32
    %c0_i32_0 = arith.constant 0 : i32
    %c0_i32_1 = arith.constant 0 : i32
    return %c0_i32, %c0_i32_0 : i32, i32
  }
  func.func @transform_3(%arg0: i32) -> (i32, i32) {
    %c0_i32 = arith.constant 0 : i32
    %c0_i32_0 = arith.constant 0 : i32
    %c0_i32_1 = arith.constant 0 : i32
    return %c0_i32, %c0_i32_0 : i32, i32
  }
  func.func @transform_4(%arg0: i32) -> (i32, i32, i32) {
    %c0_i32 = arith.constant 0 : i32
    %c0_i32_0 = arith.constant 0 : i32
    %c0_i32_1 = arith.constant 0 : i32
    return %arg0, %c0_i32, %c0_i32_0 : i32, i32, i32
  }
}

module attributes {stable_mosaic.version = 11 : i64} {
  func.func @_attn_head_kernel(%arg0: i32, %arg1: i32, %arg2: memref<1x8x32xf32, #tpu.memory_space<vmem>>, %arg3: memref<1x8x32xf32, #tpu.memory_space<vmem>>, %arg4: memref<1x8x32xf32, #tpu.memory_space<vmem>>, %arg5: memref<1x32x8xf32, #tpu.memory_space<vmem>>, %arg6: memref<1x32x8xf32, #tpu.memory_space<vmem>>, %arg7: memref<1x32x8xf32, #tpu.memory_space<vmem>>, %arg8: memref<1x1x8x8xf32, #tpu.memory_space<vmem>>) attributes {dimension_semantics = [#tpu.dimension_semantics<parallel>, #tpu.dimension_semantics<arbitrary>], iteration_bounds = array<i64: 2, 4>, scalar_prefetch = 0 : i64, scratch_operands = 0 : i64, tpu.core_type = #tpu.core_type<tc>, window_params = [{transform_indices = @transform_0, window_bounds = array<i64: 1, 8, 32>}, {transform_indices = @transform_1, window_bounds = array<i64: 1, 8, 32>}, {transform_indices = @transform_2, window_bounds = array<i64: 1, 8, 32>}, {transform_indices = @transform_3, window_bounds = array<i64: 1, 32, 8>}, {transform_indices = @transform_4, window_bounds = array<i64: 1, 32, 8>}, {transform_indices = @transform_5, window_bounds = array<i64: 1, 32, 8>}, {transform_indices = @transform_6, window_bounds = array<i64: 1, 1, 8, 8>}]} {
    %c0 = arith.constant 0 : index
    %c0_0 = arith.constant 0 : index
    %c0_1 = arith.constant 0 : index
    %0 = vector.load %arg2[%c0, %c0_0, %c0_1] : memref<1x8x32xf32, #tpu.memory_space<vmem>>, vector<1x8x32xf32>
    %1 = vector.shape_cast %0 : vector<1x8x32xf32> to vector<8x32xf32>
    %c0_2 = arith.constant 0 : index
    %c0_3 = arith.constant 0 : index
    %c0_4 = arith.constant 0 : index
    %2 = vector.load %arg5[%c0_2, %c0_3, %c0_4] : memref<1x32x8xf32, #tpu.memory_space<vmem>>, vector<1x32x8xf32>
    %3 = vector.shape_cast %2 : vector<1x32x8xf32> to vector<32x8xf32>
    %cst = arith.constant dense<0.000000e+00> : vector<8x8xf32>
    %4 = tpu.matmul %1, %3, %cst {dimension_numbers = #tpu.dot_dimension_numbers<[1], [0], [0], [1], [0, 0, 1, 1], [], []>} : vector<8x32xf32>, vector<32x8xf32>, vector<8x8xf32> -> vector<8x8xf32>
    %c0_5 = arith.constant 0 : index
    %c0_6 = arith.constant 0 : index
    %c0_7 = arith.constant 0 : index
    %5 = vector.load %arg3[%c0_5, %c0_6, %c0_7] : memref<1x8x32xf32, #tpu.memory_space<vmem>>, vector<1x8x32xf32>
    %6 = vector.shape_cast %5 : vector<1x8x32xf32> to vector<8x32xf32>
    %c0_8 = arith.constant 0 : index
    %c0_9 = arith.constant 0 : index
    %c0_10 = arith.constant 0 : index
    %7 = vector.load %arg6[%c0_8, %c0_9, %c0_10] : memref<1x32x8xf32, #tpu.memory_space<vmem>>, vector<1x32x8xf32>
    %8 = vector.shape_cast %7 : vector<1x32x8xf32> to vector<32x8xf32>
    %cst_11 = arith.constant dense<0.000000e+00> : vector<8x8xf32>
    %9 = tpu.matmul %6, %8, %cst_11 {dimension_numbers = #tpu.dot_dimension_numbers<[1], [0], [0], [1], [0, 0, 1, 1], [], []>} : vector<8x32xf32>, vector<32x8xf32>, vector<8x8xf32> -> vector<8x8xf32>
    %c0_12 = arith.constant 0 : index
    %c0_13 = arith.constant 0 : index
    %c0_14 = arith.constant 0 : index
    %10 = vector.load %arg4[%c0_12, %c0_13, %c0_14] : memref<1x8x32xf32, #tpu.memory_space<vmem>>, vector<1x8x32xf32>
    %11 = vector.shape_cast %10 : vector<1x8x32xf32> to vector<8x32xf32>
    %c0_15 = arith.constant 0 : index
    %c0_16 = arith.constant 0 : index
    %c0_17 = arith.constant 0 : index
    %12 = vector.load %arg7[%c0_15, %c0_16, %c0_17] : memref<1x32x8xf32, #tpu.memory_space<vmem>>, vector<1x32x8xf32>
    %13 = vector.shape_cast %12 : vector<1x32x8xf32> to vector<32x8xf32>
    %cst_18 = arith.constant dense<0.000000e+00> : vector<8x8xf32>
    %14 = tpu.matmul %11, %13, %cst_18 {dimension_numbers = #tpu.dot_dimension_numbers<[1], [0], [0], [1], [0, 0, 1, 1], [], []>} : vector<8x32xf32>, vector<32x8xf32>, vector<8x8xf32> -> vector<8x8xf32>
    %cst_19 = arith.constant dense<0.000000e+00> : vector<8x8xf32>
    %15 = tpu.matmul %4, %9, %cst_19 {dimension_numbers = #tpu.dot_dimension_numbers<[1], [1], [0], [0], [0, 0, 1, 0], [], []>} : vector<8x8xf32>, vector<8x8xf32>, vector<8x8xf32> -> vector<8x8xf32>
    %cst_20 = arith.constant 0.353553385 : f32
    %16 = vector.broadcast %cst_20 : f32 to vector<8x8xf32>
    %17 = arith.mulf %15, %16 : vector<8x8xf32>
    %cst_21 = arith.constant dense<0xFF800000> : vector<8xf32>
    %18 = vector.multi_reduction <maximumf>, %17, %cst_21 [1] : vector<8x8xf32> to vector<8xf32>
    %19 = vector.shape_cast %18 : vector<8xf32> to vector<8x1xf32>
    %20 = vector.broadcast %19 : vector<8x1xf32> to vector<8x8xf32>
    %21 = arith.subf %17, %20 : vector<8x8xf32>
    %22 = math.exp %21 : vector<8x8xf32>
    %cst_22 = arith.constant dense<0.000000e+00> : vector<8xf32>
    %23 = vector.multi_reduction <add>, %22, %cst_22 [1] : vector<8x8xf32> to vector<8xf32>
    %24 = vector.shape_cast %23 : vector<8xf32> to vector<8x1xf32>
    %25 = vector.broadcast %24 : vector<8x1xf32> to vector<8x8xf32>
    %26 = arith.divf %22, %25 : vector<8x8xf32>
    %cst_23 = arith.constant dense<0.000000e+00> : vector<8x8xf32>
    %27 = tpu.matmul %26, %14, %cst_23 {dimension_numbers = #tpu.dot_dimension_numbers<[1], [0], [0], [1], [0, 0, 1, 1], [], []>} : vector<8x8xf32>, vector<8x8xf32>, vector<8x8xf32> -> vector<8x8xf32>
    %c0_24 = arith.constant 0 : index
    %c0_25 = arith.constant 0 : index
    %c0_26 = arith.constant 0 : index
    %c0_27 = arith.constant 0 : index
    %28 = vector.load %arg8[%c0_24, %c0_25, %c0_26, %c0_27] : memref<1x1x8x8xf32, #tpu.memory_space<vmem>>, vector<1x1x8x8xf32>
    %29 = vector.shape_cast %28 : vector<1x1x8x8xf32> to vector<8x8xf32>
    %30 = vector.shape_cast %27 : vector<8x8xf32> to vector<1x1x8x8xf32>
    tpu.vector_store %arg8[%c0_24, %c0_25, %c0_26, %c0_27], %30 {strides = array<i32>} : memref<1x1x8x8xf32, #tpu.memory_space<vmem>>, vector<1x1x8x8xf32>,
    return
  }
  func.func @transform_0(%arg0: i32, %arg1: i32) -> (i32, i32, i32) {
    %c0_i32 = arith.constant 0 : i32
    %c0_i32_0 = arith.constant 0 : i32
    %c0_i32_1 = arith.constant 0 : i32
    return %arg0, %c0_i32, %c0_i32_0 : i32, i32, i32
  }
  func.func @transform_1(%arg0: i32, %arg1: i32) -> (i32, i32, i32) {
    %c0_i32 = arith.constant 0 : i32
    %c0_i32_0 = arith.constant 0 : i32
    %c0_i32_1 = arith.constant 0 : i32
    return %arg0, %c0_i32, %c0_i32_0 : i32, i32, i32
  }
  func.func @transform_2(%arg0: i32, %arg1: i32) -> (i32, i32, i32) {
    %c0_i32 = arith.constant 0 : i32
    %c0_i32_0 = arith.constant 0 : i32
    %c0_i32_1 = arith.constant 0 : i32
    return %arg0, %c0_i32, %c0_i32_0 : i32, i32, i32
  }
  func.func @transform_3(%arg0: i32, %arg1: i32) -> (i32, i32, i32) {
    %c0_i32 = arith.constant 0 : i32
    %c0_i32_0 = arith.constant 0 : i32
    %c0_i32_1 = arith.constant 0 : i32
    return %arg1, %c0_i32, %c0_i32_0 : i32, i32, i32
  }
  func.func @transform_4(%arg0: i32, %arg1: i32) -> (i32, i32, i32) {
    %c0_i32 = arith.constant 0 : i32
    %c0_i32_0 = arith.constant 0 : i32
    %c0_i32_1 = arith.constant 0 : i32
    return %arg1, %c0_i32, %c0_i32_0 : i32, i32, i32
  }
  func.func @transform_5(%arg0: i32, %arg1: i32) -> (i32, i32, i32) {
    %c0_i32 = arith.constant 0 : i32
    %c0_i32_0 = arith.constant 0 : i32
    %c0_i32_1 = arith.constant 0 : i32
    return %arg1, %c0_i32, %c0_i32_0 : i32, i32, i32
  }
  func.func @transform_6(%arg0: i32, %arg1: i32) -> (i32, i32, i32, i32) {
    %c0_i32 = arith.constant 0 : i32
    %c0_i32_0 = arith.constant 0 : i32
    %c0_i32_1 = arith.constant 0 : i32
    return %arg0, %arg1, %c0_i32, %c0_i32_0 : i32, i32, i32, i32
  }
}

module attributes {stable_mosaic.version = 11 : i64} {
  func.func @_fc_add_ln_kernel(%arg0: i32, %arg1: memref<16x32xf32, #tpu.memory_space<vmem>>, %arg2: memref<32x32xf32, #tpu.memory_space<vmem>>, %arg3: memref<16x32xf32, #tpu.memory_space<vmem>>, %arg4: memref<16x32xf32, #tpu.memory_space<vmem>>) attributes {dimension_semantics = [#tpu.dimension_semantics<arbitrary>], iteration_bounds = array<i64: 1>, scalar_prefetch = 0 : i64, scratch_operands = 0 : i64, tpu.core_type = #tpu.core_type<tc>, window_params = [{transform_indices = @transform_0, window_bounds = array<i64: 16, 32>}, {pipeline_mode = #tpu.pipeline_mode<synchronous>, transform_indices = @transform_1, window_bounds = array<i64: 32, 32>}, {transform_indices = @transform_2, window_bounds = array<i64: 16, 32>}, {transform_indices = @transform_3, window_bounds = array<i64: 16, 32>}]} {
    %c0 = arith.constant 0 : index
    %c0_0 = arith.constant 0 : index
    %0 = vector.load %arg1[%c0, %c0_0] : memref<16x32xf32, #tpu.memory_space<vmem>>, vector<16x32xf32>
    %c0_1 = arith.constant 0 : index
    %c0_2 = arith.constant 0 : index
    %1 = vector.load %arg2[%c0_1, %c0_2] : memref<32x32xf32, #tpu.memory_space<vmem>>, vector<32x32xf32>
    %cst = arith.constant dense<0.000000e+00> : vector<16x32xf32>
    %2 = tpu.matmul %0, %1, %cst {dimension_numbers = #tpu.dot_dimension_numbers<[1], [0], [0], [1], [0, 0, 1, 1], [], []>} : vector<16x32xf32>, vector<32x32xf32>, vector<16x32xf32> -> vector<16x32xf32>
    %c0_3 = arith.constant 0 : index
    %c0_4 = arith.constant 0 : index
    %3 = vector.load %arg3[%c0_3, %c0_4] : memref<16x32xf32, #tpu.memory_space<vmem>>, vector<16x32xf32>
    %4 = arith.addf %2, %3 : vector<16x32xf32>
    %cst_5 = arith.constant dense<0.000000e+00> : vector<16xf32>
    %5 = vector.multi_reduction <add>, %4, %cst_5 [1] : vector<16x32xf32> to vector<16xf32>
    %6 = vector.shape_cast %5 : vector<16xf32> to vector<16x1xf32>
    %cst_6 = arith.constant 3.200000e+01 : f32
    %7 = vector.broadcast %cst_6 : f32 to vector<16x1xf32>
    %8 = arith.divf %6, %7 : vector<16x1xf32>
    %9 = vector.broadcast %8 : vector<16x1xf32> to vector<16x32xf32>
    %10 = arith.subf %4, %9 : vector<16x32xf32>
    %11 = arith.mulf %10, %10 : vector<16x32xf32>
    %cst_7 = arith.constant dense<0.000000e+00> : vector<16xf32>
    %12 = vector.multi_reduction <add>, %11, %cst_7 [1] : vector<16x32xf32> to vector<16xf32>
    %13 = vector.shape_cast %12 : vector<16xf32> to vector<16x1xf32>
    %cst_8 = arith.constant 3.200000e+01 : f32
    %14 = vector.broadcast %cst_8 : f32 to vector<16x1xf32>
    %15 = arith.divf %13, %14 : vector<16x1xf32>
    %16 = vector.broadcast %8 : vector<16x1xf32> to vector<16x32xf32>
    %17 = arith.subf %4, %16 : vector<16x32xf32>
    %cst_9 = arith.constant 9.99999974E-6 : f32
    %18 = vector.broadcast %cst_9 : f32 to vector<16x1xf32>
    %19 = arith.addf %15, %18 : vector<16x1xf32>
    %20 = math.rsqrt %19 : vector<16x1xf32>
    %21 = vector.broadcast %20 : vector<16x1xf32> to vector<16x32xf32>
    %22 = arith.mulf %17, %21 : vector<16x32xf32>
    %c0_10 = arith.constant 0 : index
    %c0_11 = arith.constant 0 : index
    %23 = vector.load %arg4[%c0_10, %c0_11] : memref<16x32xf32, #tpu.memory_space<vmem>>, vector<16x32xf32>
    tpu.vector_store %arg4[%c0_10, %c0_11], %22 {strides = array<i32>} : memref<16x32xf32, #tpu.memory_space<vmem>>, vector<16x32xf32>,
    return
  }
  func.func @transform_0(%arg0: i32) -> (i32, i32) {
    %c0_i32 = arith.constant 0 : i32
    %c0_i32_0 = arith.constant 0 : i32
    return %arg0, %c0_i32 : i32, i32
  }
  func.func @transform_1(%arg0: i32) -> (i32, i32) {
    %c0_i32 = arith.constant 0 : i32
    %c0_i32_0 = arith.constant 0 : i32
    %c0_i32_1 = arith.constant 0 : i32
    return %c0_i32, %c0_i32_0 : i32, i32
  }
  func.func @transform_2(%arg0: i32) -> (i32, i32) {
    %c0_i32 = arith.constant 0 : i32
    %c0_i32_0 = arith.constant 0 : i32
    return %arg0, %c0_i32 : i32, i32
  }
  func.func @transform_3(%arg0: i32) -> (i32, i32) {
    %c0_i32 = arith.constant 0 : i32
    %c0_i32_0 = arith.constant 0 : i32
    return %arg0, %c0_i32 : i32, i32
  }
}

module attributes {stable_mosaic.version = 11 : i64} {
  func.func @_ffn_ln_kernel(%arg0: i32, %arg1: memref<16x32xf32, #tpu.memory_space<vmem>>, %arg2: memref<32x1024xf32, #tpu.memory_space<vmem>>, %arg3: memref<1024x32xf32, #tpu.memory_space<vmem>>, %arg4: memref<16x32xf32, #tpu.memory_space<vmem>>) attributes {dimension_semantics = [#tpu.dimension_semantics<arbitrary>], iteration_bounds = array<i64: 1>, scalar_prefetch = 0 : i64, scratch_operands = 0 : i64, tpu.core_type = #tpu.core_type<tc>, window_params = [{transform_indices = @transform_0, window_bounds = array<i64: 16, 32>}, {pipeline_mode = #tpu.pipeline_mode<synchronous>, transform_indices = @transform_1, window_bounds = array<i64: 32, 1024>}, {pipeline_mode = #tpu.pipeline_mode<synchronous>, transform_indices = @transform_2, window_bounds = array<i64: 1024, 32>}, {transform_indices = @transform_3, window_bounds = array<i64: 16, 32>}]} {
    %c0 = arith.constant 0 : index
    %c0_0 = arith.constant 0 : index
    %0 = vector.load %arg1[%c0, %c0_0] : memref<16x32xf32, #tpu.memory_space<vmem>>, vector<16x32xf32>
    %c0_1 = arith.constant 0 : index
    %c0_2 = arith.constant 0 : index
    %1 = vector.load %arg2[%c0_1, %c0_2] : memref<32x1024xf32, #tpu.memory_space<vmem>>, vector<32x1024xf32>
    %cst = arith.constant dense<0.000000e+00> : vector<16x1024xf32>
    %2 = tpu.matmul %0, %1, %cst {dimension_numbers = #tpu.dot_dimension_numbers<[1], [0], [0], [1], [0, 0, 1, 1], [], []>} : vector<16x32xf32>, vector<32x1024xf32>, vector<16x1024xf32> -> vector<16x1024xf32>
    %cst_3 = arith.constant 0.000000e+00 : f32
    %3 = vector.broadcast %cst_3 : f32 to vector<16x1024xf32>
    %4 = arith.maximumf %2, %3 : vector<16x1024xf32>
    %c0_4 = arith.constant 0 : index
    %c0_5 = arith.constant 0 : index
    %5 = vector.load %arg3[%c0_4, %c0_5] : memref<1024x32xf32, #tpu.memory_space<vmem>>, vector<1024x32xf32>
    %cst_6 = arith.constant dense<0.000000e+00> : vector<16x32xf32>
    %6 = tpu.matmul %4, %5, %cst_6 {dimension_numbers = #tpu.dot_dimension_numbers<[1], [0], [0], [1], [0, 0, 1, 1], [], []>} : vector<16x1024xf32>, vector<1024x32xf32>, vector<16x32xf32> -> vector<16x32xf32>
    %7 = arith.addf %6, %0 : vector<16x32xf32>
    %cst_7 = arith.constant dense<0.000000e+00> : vector<16xf32>
    %8 = vector.multi_reduction <add>, %7, %cst_7 [1] : vector<16x32xf32> to vector<16xf32>
    %9 = vector.shape_cast %8 : vector<16xf32> to vector<16x1xf32>
    %cst_8 = arith.constant 3.200000e+01 : f32
    %10 = vector.broadcast %cst_8 : f32 to vector<16x1xf32>
    %11 = arith.divf %9, %10 : vector<16x1xf32>
    %12 = vector.broadcast %11 : vector<16x1xf32> to vector<16x32xf32>
    %13 = arith.subf %7, %12 : vector<16x32xf32>
    %14 = arith.mulf %13, %13 : vector<16x32xf32>
    %cst_9 = arith.constant dense<0.000000e+00> : vector<16xf32>
    %15 = vector.multi_reduction <add>, %14, %cst_9 [1] : vector<16x32xf32> to vector<16xf32>
    %16 = vector.shape_cast %15 : vector<16xf32> to vector<16x1xf32>
    %cst_10 = arith.constant 3.200000e+01 : f32
    %17 = vector.broadcast %cst_10 : f32 to vector<16x1xf32>
    %18 = arith.divf %16, %17 : vector<16x1xf32>
    %19 = vector.broadcast %11 : vector<16x1xf32> to vector<16x32xf32>
    %20 = arith.subf %7, %19 : vector<16x32xf32>
    %cst_11 = arith.constant 9.99999974E-6 : f32
    %21 = vector.broadcast %cst_11 : f32 to vector<16x1xf32>
    %22 = arith.addf %18, %21 : vector<16x1xf32>
    %23 = math.rsqrt %22 : vector<16x1xf32>
    %24 = vector.broadcast %23 : vector<16x1xf32> to vector<16x32xf32>
    %25 = arith.mulf %20, %24 : vector<16x32xf32>
    %c0_12 = arith.constant 0 : index
    %c0_13 = arith.constant 0 : index
    %26 = vector.load %arg4[%c0_12, %c0_13] : memref<16x32xf32, #tpu.memory_space<vmem>>, vector<16x32xf32>
    tpu.vector_store %arg4[%c0_12, %c0_13], %25 {strides = array<i32>} : memref<16x32xf32, #tpu.memory_space<vmem>>, vector<16x32xf32>,
    return
  }
  func.func @transform_0(%arg0: i32) -> (i32, i32) {
    %c0_i32 = arith.constant 0 : i32
    %c0_i32_0 = arith.constant 0 : i32
    return %arg0, %c0_i32 : i32, i32
  }
  func.func @transform_1(%arg0: i32) -> (i32, i32) {
    %c0_i32 = arith.constant 0 : i32
    %c0_i32_0 = arith.constant 0 : i32
    %c0_i32_1 = arith.constant 0 : i32
    return %c0_i32, %c0_i32_0 : i32, i32
  }
  func.func @transform_2(%arg0: i32) -> (i32, i32) {
    %c0_i32 = arith.constant 0 : i32
    %c0_i32_0 = arith.constant 0 : i32
    %c0_i32_1 = arith.constant 0 : i32
    return %c0_i32, %c0_i32_0 : i32, i32
  }
  func.func @transform_3(%arg0: i32) -> (i32, i32) {
    %c0_i32 = arith.constant 0 : i32
    %c0_i32_0 = arith.constant 0 : i32
    return %arg0, %c0_i32 : i32, i32
  }
}

module attributes {stable_mosaic.version = 11 : i64} {
  func.func @_ffn_ln_kernel(%arg0: i32, %arg1: memref<16x32xf32, #tpu.memory_space<vmem>>, %arg2: memref<32x1024xf32, #tpu.memory_space<vmem>>, %arg3: memref<1024x32xf32, #tpu.memory_space<vmem>>, %arg4: memref<16x32xf32, #tpu.memory_space<vmem>>) attributes {dimension_semantics = [#tpu.dimension_semantics<arbitrary>], iteration_bounds = array<i64: 1>, scalar_prefetch = 0 : i64, scratch_operands = 0 : i64, tpu.core_type = #tpu.core_type<tc>, window_params = [{transform_indices = @transform_0, window_bounds = array<i64: 16, 32>}, {pipeline_mode = #tpu.pipeline_mode<synchronous>, transform_indices = @transform_1, window_bounds = array<i64: 32, 1024>}, {pipeline_mode = #tpu.pipeline_mode<synchronous>, transform_indices = @transform_2, window_bounds = array<i64: 1024, 32>}, {transform_indices = @transform_3, window_bounds = array<i64: 16, 32>}]} {
    %c0 = arith.constant 0 : index
    %c0_0 = arith.constant 0 : index
    %0 = vector.load %arg1[%c0, %c0_0] : memref<16x32xf32, #tpu.memory_space<vmem>>, vector<16x32xf32>
    %c0_1 = arith.constant 0 : index
    %c0_2 = arith.constant 0 : index
    %1 = vector.load %arg2[%c0_1, %c0_2] : memref<32x1024xf32, #tpu.memory_space<vmem>>, vector<32x1024xf32>
    %cst = arith.constant dense<0.000000e+00> : vector<16x1024xf32>
    %2 = tpu.matmul %0, %1, %cst {dimension_numbers = #tpu.dot_dimension_numbers<[1], [0], [0], [1], [0, 0, 1, 1], [], []>} : vector<16x32xf32>, vector<32x1024xf32>, vector<16x1024xf32> -> vector<16x1024xf32>
    %cst_3 = arith.constant 0.000000e+00 : f32
    %3 = vector.broadcast %cst_3 : f32 to vector<16x1024xf32>
    %4 = arith.maximumf %2, %3 : vector<16x1024xf32>
    %c0_4 = arith.constant 0 : index
    %c0_5 = arith.constant 0 : index
    %5 = vector.load %arg3[%c0_4, %c0_5] : memref<1024x32xf32, #tpu.memory_space<vmem>>, vector<1024x32xf32>
    %cst_6 = arith.constant dense<0.000000e+00> : vector<16x32xf32>
    %6 = tpu.matmul %4, %5, %cst_6 {dimension_numbers = #tpu.dot_dimension_numbers<[1], [0], [0], [1], [0, 0, 1, 1], [], []>} : vector<16x1024xf32>, vector<1024x32xf32>, vector<16x32xf32> -> vector<16x32xf32>
    %7 = arith.addf %6, %0 : vector<16x32xf32>
    %cst_7 = arith.constant dense<0.000000e+00> : vector<16xf32>
    %8 = vector.multi_reduction <add>, %7, %cst_7 [1] : vector<16x32xf32> to vector<16xf32>
    %9 = vector.shape_cast %8 : vector<16xf32> to vector<16x1xf32>
    %cst_8 = arith.constant 3.200000e+01 : f32
    %10 = vector.broadcast %cst_8 : f32 to vector<16x1xf32>
    %11 = arith.divf %9, %10 : vector<16x1xf32>
    %12 = vector.broadcast %11 : vector<16x1xf32> to vector<16x32xf32>
    %13 = arith.subf %7, %12 : vector<16x32xf32>
    %14 = arith.mulf %13, %13 : vector<16x32xf32>
    %cst_9 = arith.constant dense<0.000000e+00> : vector<16xf32>
    %15 = vector.multi_reduction <add>, %14, %cst_9 [1] : vector<16x32xf32> to vector<16xf32>
    %16 = vector.shape_cast %15 : vector<16xf32> to vector<16x1xf32>
    %cst_10 = arith.constant 3.200000e+01 : f32
    %17 = vector.broadcast %cst_10 : f32 to vector<16x1xf32>
    %18 = arith.divf %16, %17 : vector<16x1xf32>
    %19 = vector.broadcast %11 : vector<16x1xf32> to vector<16x32xf32>
    %20 = arith.subf %7, %19 : vector<16x32xf32>
    %cst_11 = arith.constant 9.99999974E-6 : f32
    %21 = vector.broadcast %cst_11 : f32 to vector<16x1xf32>
    %22 = arith.addf %18, %21 : vector<16x1xf32>
    %23 = math.rsqrt %22 : vector<16x1xf32>
    %24 = vector.broadcast %23 : vector<16x1xf32> to vector<16x32xf32>
    %25 = arith.mulf %20, %24 : vector<16x32xf32>
    %c0_12 = arith.constant 0 : index
    %c0_13 = arith.constant 0 : index
    %26 = vector.load %arg4[%c0_12, %c0_13] : memref<16x32xf32, #tpu.memory_space<vmem>>, vector<16x32xf32>
    tpu.vector_store %arg4[%c0_12, %c0_13], %25 {strides = array<i32>} : memref<16x32xf32, #tpu.memory_space<vmem>>, vector<16x32xf32>,
    return
  }
  func.func @transform_0(%arg0: i32) -> (i32, i32) {
    %c0_i32 = arith.constant 0 : i32
    %c0_i32_0 = arith.constant 0 : i32
    return %arg0, %c0_i32 : i32, i32
  }
  func.func @transform_1(%arg0: i32) -> (i32, i32) {
    %c0_i32 = arith.constant 0 : i32
    %c0_i32_0 = arith.constant 0 : i32
    %c0_i32_1 = arith.constant 0 : i32
    return %c0_i32, %c0_i32_0 : i32, i32
  }
  func.func @transform_2(%arg0: i32) -> (i32, i32) {
    %c0_i32 = arith.constant 0 : i32
    %c0_i32_0 = arith.constant 0 : i32
    %c0_i32_1 = arith.constant 0 : i32
    return %c0_i32, %c0_i32_0 : i32, i32
  }
  func.func @transform_3(%arg0: i32) -> (i32, i32) {
    %c0_i32 = arith.constant 0 : i32
    %c0_i32_0 = arith.constant 0 : i32
    return %arg0, %c0_i32 : i32, i32
  }
}

</mosaic_0001>

<bundles_post_ra>
// kernel: decoder_forward.13
= control target key start
LH: loop header
LB: loop body
LE: loop exit
PB: predicated region body
PF: predicated region fallthrough
CT: control target
= control target key end

     0   :  { %vm22_vm0 = vcmask 261120   ;;  %v122_v14 = vmov 32.0   ;;  %s181_s1 = inlined_call_operand.vmem [shape: f32[32,32], index: 1, kind: input, shape index: {}]   ;;  %s182_s0 = inlined_call_operand.vmem [shape: f32[16,32], index: 0, kind: input, shape index: {}]   ;;  %s183_s2 = inlined_call_operand.vmem [shape: f32[16,32], index: 2, kind: input, shape index: {}]   ;;  %s184_s3 = inlined_call_operand.vmem [shape: f32[16,32], index: 3, kind: output, shape index: {}]  }
   0x1   :  { %v19_v0 = vld [vmem:[%s181_s1 + $0x18] sm:$0xff]  ;;  %v18_v1 = vld [vmem:[%s181_s1 + $0x10] sm:$0xff]  ;;  %v17_v2 = vld [vmem:[%s181_s1 + $0x8] sm:$0xff]  ;;  %116 = vrcp.f32 %v122_v14 }
   0x2   :  { %41 = vmatpush.msra.mxu0 %v19_v0  ;;  %111 = vmatpush.msra.mxu1 %v19_v0  ;;  %v16_v3 = vld [vmem:[%s181_s1] sm:$0xff]  ;;  %v15_v5 = vld [vmem:[%s182_s0 + $0x8] sm:$0xff] }
   0x3   :  { %v14_v4 = vld [vmem:[%s182_s0] sm:$0xff]  ;;  %v21_v9 = vld [vmem:[%s183_s2 + $0x8] sm:$0xff] }
   0x4   :  { %42 = vmatpush.msra.mxu0 %v18_v1  ;;  %112 = vmatpush.msra.mxu1 %v18_v1  ;;  %v20_v6 = vld [vmem:[%s183_s2] sm:$0xff] }
   0x6   :  { %43 = vmatpush.msra.mxu0 %v17_v2  ;;  %113 = vmatpush.msra.mxu1 %v17_v2 }
   0x7   :  { %v117_v15 = vpop.eup %116 }
   0x8   :  { %44 = vmatpush.msra.mxu0 %v16_v3  ;;  %114 = vmatpush.msra.mxu1 %v16_v3  ;;  %v59_v16 = vmul.f32 32.0, %v117_v15  ;;  %vm63_vm1 = vweird.f32 %v117_v15 }
   0x9   :  { %109 = vmatmul.msk.f32.vlgmr.msra.gmra.mxu0 %vm22_vm0, %v14_v4  ;;  %110 = vmatmul.msk.f32.vlgmr.msra.gmra.mxu1 %vm22_vm0, %v15_v5 }
   0xa   :  { %v60_v17 = vsub.f32 1.0, %v59_v16 }
   0xc   :  { %v61_v18 = vmul.f32 %v117_v15, %v60_v17 }
   0xe   :  { %v62_v19 = vadd.f32 %v117_v15, %v61_v18 }
  0x10   :  { %v64_v20 = vsel %vm63_vm1, %v117_v15, %v62_v19 }
  0x86   :  { %v46_v7 = vpop.f32.mrf.mxu0  ;;  %v49_v10 = vpop.f32.mrf.mxu1 }
  0x87   :  { %v47_v8 = vadd.f32 %v46_v7, %v20_v6  ;;  %v50_v12 = vadd.f32 %v49_v10, %v21_v9 }
  0x89   :  { %v52_v11 = vsel %vm22_vm0, %v47_v8, 0.0  ;;  %v55_v13 = vsel %vm22_vm0, %v50_v12, 0.0 }
  0x8a   :  { %53 = vadd.xlane.f32.xlu0 %v52_v11 }
  0x92   :  { %56 = vadd.xlane.f32.xlu0 %v55_v13 }
  0xfd   :  { %v54_v21 = vpop.xlane.xlu0 %53 }
  0xfe   :  { %v65_v22 = vmul.f32 %v64_v20, %v54_v21 }
 0x100   :  { %v67_v23 = vsub.f32 %v47_v8, %v65_v22 }
 0x102   :  { %v69_v24 = vmul.f32 %v67_v23, %v67_v23 }
 0x104   :  { %v71_v25 = vsel %vm22_vm0, %v69_v24, 0.0 }
 0x105   :  { %72 = vadd.xlane.f32.xlu1 %v71_v25  ;;  %v57_v26 = vpop.xlane.xlu0 %56 }
 0x106   :  { %v66_v27 = vmul.f32 %v64_v20, %v57_v26 }
 0x108   :  { %v68_v28 = vsub.f32 %v50_v12, %v66_v27 }
 0x10a   :  { %v70_v29 = vmul.f32 %v68_v28, %v68_v28 }
 0x10c   :  { %v74_v30 = vsel %vm22_vm0, %v70_v29, 0.0 }
 0x10d   :  { %75 = vadd.xlane.f32.xlu1 %v74_v30 }
 0x178   :  { %v73_v31 = vpop.xlane.xlu1 %72 }
 0x179   :  { %v77_v32 = vmul.f32 %v73_v31, %v64_v20 }
 0x17b   :  { %v79_v33 = vadd.f32 1e-05, %v77_v32 }
 0x17d   :  { %118 = vrsqrt.f32 %v79_v33  ;;  %vm87_vm3 = vweird.f32 %v79_v33 }
 0x180   :  { %v76_v34 = vpop.xlane.xlu1 %75 }
 0x181   :  { %v78_v35 = vmul.f32 %v76_v34, %v64_v20 }
 0x183   :  { %v119_v36 = vpop.eup %118  ;;  %v80_v37 = vadd.f32 1e-05, %v78_v35 }
 0x184   :  { %v82_v38 = vmul.f32 %v119_v36, %v79_v33  ;;  %vm88_vm2 = vweird.f32 %v119_v36 }
 0x185   :  { %120 = vrsqrt.f32 %v80_v37  ;;  %vm89_vm4 = vmor %vm87_vm3, %vm88_vm2  ;;  %vm97_vm6 = vweird.f32 %v80_v37 }
 0x186   :  { %v83_v39 = vmul.f32 %v119_v36, %v82_v38 }
 0x188   :  { %v84_v40 = vmul.f32 0.5, %v83_v39 }
 0x18a   :  { %v85_v41 = vsub.f32 1.5, %v84_v40 }
 0x18b   :  { %v121_v42 = vpop.eup %120 }
 0x18c   :  { %v86_v43 = vmul.f32 %v119_v36, %v85_v41  ;;  %v92_v44 = vmul.f32 %v121_v42, %v80_v37  ;;  %vm98_vm5 = vweird.f32 %v121_v42 }
 0x18d   :  { %vm99_vm7 = vmor %vm97_vm6, %vm98_vm5 }
 0x18e   :  { %v90_v45 = vsel %vm89_vm4, %v119_v36, %v86_v43  ;;  %v93_v46 = vmul.f32 %v121_v42, %v92_v44 }
 0x18f   :  { %v101_v47 = vmul.f32 %v90_v45, %v67_v23 }
 0x190   :  { %v94_v48 = vmul.f32 0.5, %v93_v46 }
 0x191   :  { %103 = vst.msk [vmem:[%s184_s3] sm:$0xff] %vm22_vm0, %v101_v47 }
 0x192   :  { %v95_v49 = vsub.f32 1.5, %v94_v48 }
 0x194   :  { %v96_v50 = vmul.f32 %v121_v42, %v95_v49 }
 0x196   :  { %v100_v51 = vsel %vm99_vm7, %v121_v42, %v96_v50 }
 0x197   :  { %v102_v52 = vmul.f32 %v100_v51, %v68_v28 }
 0x199   :  { %104 = vst.msk [vmem:[%s184_s3 + $0x8] sm:$0xff] %vm22_vm0, %v102_v52 }

// kernel: decoder_forward.11
= control target key start
LH: loop header
LB: loop body
LE: loop exit
PB: predicated region body
PF: predicated region fallthrough
CT: control target
= control target key end

     0   :  { %9 = vsyncpa [#allocation3], 0  ;;  %s714_s0 = inlined_call_operand.hbm [shape: f32[2,8,16], index: 0, kind: input, shape index: {}]   ;;  %s715_s1 = inlined_call_operand.hbm [shape: f32[16,32], index: 1, kind: input, shape index: {}]   ;;  %s716_s2 = inlined_call_operand.hbm [shape: f32[1,32], index: 2, kind: input, shape index: {}]   ;;  %s717_s3 = inlined_call_operand.vmem [shape: f32[8,32], index: 3, kind: input, shape index: {}]   ;;  %s718_s4 = inlined_call_operand.vmem [shape: f32[2,8,32], index: 4, kind: output, shape index: {}]  }
   0x1   :  { %11 = vsyncpa [#allocation3 + $0x1], 0 }
   0x2   :  { %12 = vsyncpa [#allocation5], 0  ;;  %s602_s15 = smov 0   ;;  %s604_s16 = smov 0  }
   0x3   :  { %s606_s17 = smov 0   ;;  %s608_s18 = smov 0  }
   0x4 LB: > { %s149_s21 = sshll.u32 %s715_s1, 4  ;;  %s626_s22 = sadd.s32 4294967295, %s571_s18   ;;  %s571_s18 = sphi %s608_s18, %s725_s18   ;;  %s567_s17 = sphi %s606_s17, %s724_s17   ;;  %s563_s16 = sphi %s604_s16, %s723_s16   ;;  %s559_s15 = sphi %s602_s15, %s722_s15   ;;  %s150_s21 = int_to_ptr.hbm [resolvable:$true] %s149_s21 }
   0x5   : > { %p366_p0 = scmp.ge.s32.totalorder %s571_s18, 1  ;;  %p39_p1 = scmp.eq.s32.totalorder %s626_s22, 0 }
   0x6   : > { %p138_p2 = scmp.lt.s32.totalorder %s571_s18, 3  ;;  %s573_s24 = smov [#allocation4]  }
   0x7   : > { %s151_s25 = sshll.u32 %s573_s24, 4  ;;  %s164_s28 = sshll.u32 %s716_s2, 4  ;;  %s152_s25 = int_to_ptr.vmem [resolvable:$true] %s151_s25  ;;  %s165_s28 = int_to_ptr.hbm [resolvable:$true] %s164_s28 }
   0x8   : > { %p631_p3 = pnand %p366_p0, %p138_p2  ;;  %s574_s29 = smov [#allocation6]  }
   0x9   : > { %s166_s30 = sshll.u32 %s574_s29, 4  ;;  %s575_s5 = smov 128   ;;  %s167_s30 = int_to_ptr.vmem [resolvable:$true] %s166_s30 }
   0xa   : > { %p390_p4 = pneg %p631_p3  ;;  %s576_s6 = smov 8  }
   0xb   : > { %s643_s7 = sadd.s32 1, %s571_s18   ;;  %s25_s9 = sadd.s32 1, %s567_s17 }
   0xc   : > { %p391_p5 = pnand %p390_p4, %p39_p1  ;;  %s22_s8 = ssub.s32 %s571_s18, %s643_s7 }
   0xd   : > { %p23_p6 = scmp.eq.s32.totalorder %s22_s8, 0  ;;  %p32_p7 = scmp.ne.s32.totalorder %s567_s17, %s563_s16 }
   0xe   : > { %393 = dma.hbm_to_vmem [thread:$0]  (!%p391_p5), %s150_s21, 256, %s152_s25, [#allocation5], %s575_s5, %s575_s5, %s576_s6  }
   0xf   : > { %396 = dma.hbm_to_vmem [thread:$0]  (!%p391_p5), %s165_s28, 16, %s167_s30, [#allocation5]  }
  0x10   : > { %p33_p8 = scmp.eq.s32.totalorder %s571_s18, 0  ;;  %p38_p9 = scmp.ne.s32.totalorder %s563_s16, %s559_s15 }
  0x11   : > { %s654_s10 = scalar_select %p23_p6, %s567_s17, %s25_s9  }
  0x12   : > { %p658_p10 = por %p39_p1, %p38_p9  ;;  %p403_p11 = scmp.lt.s32.totalorder %s571_s18, 2 }
  0x13   : > { %s180_s12 = sand.u32 1, %s567_s17   ;;  %s371_s13 = sshll.u32 %s571_s18, 3 }
  0x14   : > { %p34_p12 = por %p33_p8, %p32_p7  ;;  %s370_s14 = sshll.u32 %s180_s12, 3 }
  0x15   : > { %s188_s21 = scalar_lea.hbm %s714_s0, %s371_s13  ;;  %s184_s25 = scalar_lea.vmem [#allocation2], %s370_s14 }
  0x16   : > { %s190_s24 = sshll.u32 %s188_s21, 4  ;;  %s192_s26 = sshll.u32 %s184_s25, 4  ;;  %s191_s24 = int_to_ptr.hbm [resolvable:$true] %s190_s24  ;;  %s193_s26 = int_to_ptr.vmem [resolvable:$true] %s192_s26 }
  0x17   : > { %p668_p13 = pnand %p403_p11, %p34_p12  ;;  %s181_s27 = scalar_lea.sflag [#allocation3], %s180_s12 }
  0x18   : > { %s503_s28 = sshra.s32 %s191_s24, 4  ;;  %s510_s5 = scalar_lea.hbm %s714_s0, 16  ;;  %s504_s28 = int_to_ptr.hbm [resolvable:$true] %s503_s28 }
  0x19   : > { %s505_s18 = scalar_lea.hbm %s504_s28, 8  ;;  %p507_p2 = pneg %p668_p13 }
  0x1a   : > { %p506_p0 = scmp.ne.s32.totalorder %s504_s28, %s505_s18  ;;  %p511_p6 = scmp.lt.s32.totalorder %s504_s28, %s714_s0 }
  0x1b   : > { %p512_p7 = scmp.lt.s32.totalorder %s510_s5, %s505_s18 }
  0x1c   : > { %p508_p4 = pnand %p507_p2, %p506_p0 }
  0x1d   : > { %p513_p8 = por %p512_p7, %p511_p6 }
  0x1e   : > { %p509_p5 = pneg %p508_p4 }
  0x20   : > { %p514_p9 = pnand %p513_p8, %p509_p5 }
  0x22   : > { %517 = shalt.err (!%p514_p9)
}
  0x23   : > { %400 = dma.hbm_to_vmem [thread:$0]  (!%p668_p13), %s191_s24, 128, %s193_s26, %s181_s27  }
  0x24   : > { %201 = sbr.rel (%p631_p3) target bundleno = 179 (0xb3), region = 36  ;;  %s203_s9 = sand.u32 (!%p631_p3), 1, %s563_s16  }
  0x25   : > { %s373_s12 = sshll.u32 (!%p631_p3), %s203_s9, 3  ;;  %s204_s13 = scalar_lea.sflag (!%p631_p3), [#allocation3], %s203_s9 }
  0x26   : > { %s207_s14 = scalar_lea.vmem (!%p631_p3), [#allocation2], %s373_s12 }
  0x29   : > { %550 = dma.done.wait (%p658_p10), %s204_s13, 128  }
  0x2a   : > { %552 = vsyncadd (%p658_p10), %s204_s13, 4294967168 }
  0x2b   : > { %554 = dma.done.wait (%p39_p1), [#allocation5], 272  }
  0x2c   : > { %556 = vsyncadd (%p39_p1), [#allocation5], 4294967024  ;;  %v248_v0 = vld [vmem:[#allocation4 + $0x8] sm:$0xff]  ;;  %v247_v1 = vld [vmem:[#allocation4] sm:$0xff]  ;;  %vm253_vm0 = vcmask 130048   ;;  %p242_p3 = scmp.lt.s32.totalorder %s626_s22, 1 }
  0x2d   : > { %271 = vmatpush.msra.mxu0 %v248_v0  ;;  %v246_v2 = vld [vmem:[%s207_s14] sm:$0xff]  ;;  %vm279_vm1 = vcmask 261120  }
  0x2e   : > { %s727_s22 = smov (!%p242_p3, %s626_s22), 1  ;;  %v442_v3 = vld [vmem:[#allocation6] ss:$0 sm:$0xff] }
  0x2f   : > { %272 = vmatpush.msra.mxu0 %v247_v1  ;;  %s376_s23 = sshll.u32 %s727_s22, 3  ;;  %v277_v5 = vld [vmem:[%s717_s3] sm:$0xff] }
  0x30   : > { %377 = vmatmul.msk.f32.vlgmr.msra.gmra.mxu0 %vm253_vm0, %v246_v2  ;;  %s245_s24 = scalar_lea.vmem %s718_s4, %s376_s23 }
  0xad   : > { %v274_v4 = vpop.f32.mrf.mxu0 }
  0xae   : > { %v275_v6 = vadd.f32 %v442_v3, %v274_v4 }
  0xb0   : > { %v278_v7 = vadd.f32 %v277_v5, %v275_v6 }
  0xb2   : > { %280 = vst.msk [vmem:[%s245_s24] sm:$0xff] %vm279_vm1, %v278_v7 }
  0xb3 PF: > { %p15_p1 = scmp.ge.s32.totalorder %s643_s7, 4   ;;  %s722_s15 = smov %s563_s16 }
  0xb4   : > { %s723_s16 = smov %s567_s17  ;;  %s724_s17 = smov %s654_s10 }
  0xb5   : > { %s725_s18 = smov %s643_s7  ;;  %17 = sbr.rel (!%p15_p1) target bundleno = 4 (0x4), region = 84 }
  0xba   :  { %300 = vsyncpa [#allocation3], 1 }
  0xbb   :  { %302 = vsyncpa [#allocation3 + $0x1], 1 }
  0xbc   :  { %303 = vsyncpa [#allocation5], 1 }

// kernel: decoder_forward.12
= control target key start
LH: loop header
LB: loop body
LE: loop exit
PB: predicated region body
PF: predicated region fallthrough
CT: control target
= control target key end

     0   :  { %s810_s21 = smov 0   ;;  %s812_s22 = smov 0   ;;  %s903_s0 = inlined_call_operand.vmem [shape: f32[2,8,32], index: 0, kind: input, shape index: {}, may-alias: {0,1,2}]   ;;  %s904_s1 = inlined_call_operand.vmem [shape: f32[2,8,32], index: 1, kind: input, shape index: {}, may-alias: {0,1,2}]   ;;  %s905_s2 = inlined_call_operand.vmem [shape: f32[2,8,32], index: 2, kind: input, shape index: {}, may-alias: {0,1,2}]   ;;  %s906_s3 = inlined_call_operand.vmem [shape: f32[4,32,8], index: 3, kind: input, shape index: {}]   ;;  %s907_s4 = inlined_call_operand.vmem [shape: f32[4,32,8], index: 4, kind: input, shape index: {}]   ;;  %s908_s5 = inlined_call_operand.vmem [shape: f32[4,32,8], index: 5, kind: input, shape index: {}]   ;;  %s909_s6 = inlined_call_operand.vmem [shape: f32[2,4,8,8], index: 6, kind: output, shape index: {}]  }
   0x1   :  { %s814_s23 = smov 0   ;;  %s816_s24 = smov 0  }
   0x2   :  { %s818_s25 = smov 0  }
   0x3 LB: > { %s25_s26 = sadd.s32 1, %s765_s23  ;;  %s28_s27 = sadd.s32 1, %s769_s24  ;;  %s773_s25 = sphi %s818_s25, %s16_s25   ;;  %s769_s24 = sphi %s816_s24, %s913_s24   ;;  %s765_s23 = sphi %s814_s23, %s912_s23   ;;  %s761_s22 = sphi %s812_s22, %s911_s22   ;;  %s757_s21 = sphi %s810_s21, %s910_s21  }
   0x4   : > { %p26_p0 = scmp.ge.s32.totalorder %s25_s26, 4  ;;  %p668_p1 = scmp.ge.s32.totalorder %s773_s25, 1 }
   0x5   : > { %p273_p2 = scmp.lt.s32.totalorder %s773_s25, 9 }
   0x6   : > { %s915_s26 = smov (%p26_p0, %s25_s26), 0  ;;  %s917_s27 = smov (!%p26_p0, %s28_s27), %s769_s24 }
   0x7   : > { %p274_p3 = pnand %p668_p1, %p273_p2  ;;  %p30_p4 = scmp.ge.s32.totalorder %s917_s27, 2 }
   0x8   : > { %p340_p5 = scmp.lt.s32.totalorder (!%p274_p3), %s757_s21, 3  ;;  %p328_p6 = scmp.lt.s32.totalorder (!%p274_p3), %s761_s22, 1 }
   0x9   : > { %s919_s27 = smov (%p30_p4, %s917_s27), 0  ;;  %277 = sbr.rel (%p274_p3) target bundleno = 685 (0x2ad), region = 44 }
   0xe   : > { %s921_s21 = smov (!%p340_p5, %s757_s21), 3  ;;  %s923_s22 = smov (!%p328_p6, %s761_s22), 1  ;;  %vm368_vm0 = vcmask 261120   ;;  %vm448_vm1 = vcmask 64512  }
   0xf   : > { %s845_s28 = sshll.u32 %s921_s21, 5  ;;  %s856_s11 = sshll.u32 %s923_s22, 3 }
  0x10   : > { %s349_s7 = scalar_lea.vmem %s907_s4, %s845_s28  ;;  %s344_s10 = scalar_lea.vmem %s906_s3, %s845_s28 }
  0x11   : > { %v396_v0 = vld [vmem:[%s349_s7 + $0x18] sm:$0xff]  ;;  %v395_v1 = vld [vmem:[%s349_s7 + $0x10] sm:$0xff]  ;;  %v394_v4 = vld [vmem:[%s349_s7 + $0x8] sm:$0xff]  ;;  %s335_s14 = scalar_lea.vmem %s904_s1, %s856_s11  ;;  %s331_s17 = scalar_lea.vmem %s903_s0, %s856_s11 }
  0x12   : > { %v367_v2 = vld [vmem:[%s344_s10 + $0x18] sm:$0xff]  ;;  %412 = vmatpush.msra.mxu1 %v396_v0  ;;  %v366_v3 = vld [vmem:[%s344_s10 + $0x10] sm:$0xff]  ;;  %v365_v5 = vld [vmem:[%s344_s10 + $0x8] sm:$0xff]  ;;  %s354_s20 = scalar_lea.vmem %s908_s5, %s845_s28  ;;  %s678_s28 = sshll.u32 %s923_s22, 2 }
  0x13   : > { %384 = vmatpush.msra.mxu0 %v367_v2  ;;  %v393_v6 = vld [vmem:[%s349_s7] sm:$0xff]  ;;  %v424_v15 = vld [vmem:[%s354_s20 + $0x18] sm:$0xff]  ;;  %v423_v16 = vld [vmem:[%s354_s20 + $0x10] sm:$0xff]  ;;  %s339_s7 = scalar_lea.vmem %s905_s2, %s856_s11  ;;  %s360_s8 = sadd.s32 %s678_s28, %s921_s21 }
  0x14   : > { %413 = vmatpush.msra.mxu1 %v395_v1  ;;  %v364_v7 = vld [vmem:[%s344_s10] sm:$0xff]  ;;  %440 = vmatpush.msra.mxu2 %v424_v15  ;;  %v422_v17 = vld [vmem:[%s354_s20 + $0x8] sm:$0xff]  ;;  %s679_s9 = sshll.u32 %s360_s8, 3 }
  0x15   : > { %385 = vmatpush.msra.mxu0 %v366_v3  ;;  %v392_v8 = vld [vmem:[%s335_s14] sm:$0xff]  ;;  %s362_s12 = scalar_lea.vmem %s909_s6, %s679_s9 }
  0x16   : > { %414 = vmatpush.msra.mxu1 %v394_v4  ;;  %v363_v9 = vld [vmem:[%s331_s17] sm:$0xff]  ;;  %441 = vmatpush.msra.mxu2 %v423_v16 }
  0x17   : > { %386 = vmatpush.msra.mxu0 %v365_v5  ;;  %v421_v18 = vld [vmem:[%s354_s20] sm:$0xff] }
  0x18   : > { %415 = vmatpush.msra.mxu1 %v393_v6  ;;  %442 = vmatpush.msra.mxu2 %v422_v17  ;;  %v420_v19 = vld [vmem:[%s339_s7] sm:$0xff] }
  0x19   : > { %387 = vmatpush.msra.mxu0 %v364_v7  ;;  %681 = vmatmul.msk.f32.vlgmr.msra.gmra.mxu1 %vm368_vm0, %v392_v8 }
  0x1a   : > { %680 = vmatmul.msk.f32.vlgmr.msra.gmra.mxu0 %vm368_vm0, %v363_v9  ;;  %443 = vmatpush.msra.mxu2 %v421_v18 }
  0x1b   : > { %682 = vmatmul.msk.f32.vlgmr.msra.gmra.mxu2 %vm368_vm0, %v420_v19 }
  0x96   : > { %v417_v10 = vpop.f32.mrf.mxu1 }
  0x97   : > { %683 = vmatpush.xpose.msk.msra.mxu3 %vm448_vm1, %v417_v10  ;;  %v389_v11 = vpop.f32.mrf.mxu0 }
  0x9a   : > { %684 = vmatmul.msk.f32.vlgmr.msra.gmra.mxu3 %vm448_vm1, %v389_v11 }
  0x9e   : > { %v445_v25 = vpop.f32.mrf.mxu2 }
  0x9f   : > { %518 = vmatpush.msrb.mxu3 %v445_v25 }
 0x11d   : > { %v472_v12 = vpop.f32.mrf.mxu3 }
 0x11e   : > { %v475_v13 = vmul.f32 0.35355338, %v472_v12 }
 0x120   : > { %v476_v14 = vsel %vm448_vm1, %v475_v13, -inf }
 0x121   : > { %477 = vmax.xlane.f32.xlu0 %v476_v14 }
 0x194   : > { %v478_v20 = vpop.xlane.xlu0 %477 }
 0x195   : > { %v479_v21 = vsub.f32 %v475_v13, %v478_v20 }
 0x197   : > { %v480_v22 = vmul.f32 1.442695, %v479_v21 }
 0x199   : > { %731 = vpow2.f32 %v480_v22 }
 0x19f   : > { %v732_v23 = vpop.eup %731 }
 0x1a0   : > { %v482_v24 = vsel %vm448_vm1, %v732_v23, 0.0 }
 0x1a1   : > { %483 = vadd.xlane.f32.xlu0 %v482_v24 }
 0x214   : > { %v484_v26 = vpop.xlane.xlu0 %483 }
 0x215   : > { %733 = vrcp.f32 %v484_v26  ;;  %v496_v30 = vand.u32 2147483648, %v484_v26  ;;  %v494_v32 = vand.u32 2147483647, %v484_v26  ;;  %vm490_vm3 = vweird.f32 %v484_v26 }
 0x217   : > { %v497_v34 = vor.u32 1.1754944e-38, %v496_v30  ;;  %vm495_vm5 = vcmp.eq.f32.partialorder %v494_v32, 8.507059e+37 }
 0x21b   : > { %v734_v27 = vpop.eup %733 }
 0x21c   : > { %v486_v28 = vmul.f32 %v734_v27, %v484_v26  ;;  %vm491_vm2 = vweird.f32 %v734_v27 }
 0x21d   : > { %vm492_vm4 = vmor %vm490_vm3, %vm491_vm2 }
 0x21e   : > { %v487_v29 = vsub.f32 1.0, %v486_v28 }
 0x220   : > { %v488_v31 = vmul.f32 %v734_v27, %v487_v29 }
 0x222   : > { %v489_v33 = vadd.f32 %v734_v27, %v488_v31 }
 0x224   : > { %v493_v35 = vsel %vm492_vm4, %v734_v27, %v489_v33 }
 0x225   : > { %v498_v36 = vsel %vm495_vm5, %v497_v34, %v493_v35 }
 0x226   : > { %v499_v37 = vmul.f32 %v732_v23, %v498_v36 }
 0x228   : > { %685 = vmatmul.msk.f32.vlgmr.msrb.gmra.mxu3 %vm448_vm1, %v499_v37 }
 0x2ab   : > { %v520_v38 = vpop.f32.mrf.mxu3 }
 0x2ac   : > { %523 = vst.msk [vmem:[%s362_s12] sm:$0xff] %vm448_vm1, %v520_v38 }
 0x2ad PF: > { %s16_s25 = sadd.s32 1, %s773_s25   ;;  %s910_s21 = smov %s765_s23 }
 0x2ae   : > { %p13_p7 = scmp.ge.s32.totalorder %s16_s25, 10   ;;  %s911_s22 = smov %s769_s24 }
 0x2af   : > { %s912_s23 = smov %s915_s26  ;;  %s913_s24 = smov %s919_s27 }
 0x2b0   :  { %15 = sbr.rel (!%p13_p7) target bundleno = 3 (0x3), region = 89 }

// kernel: decoder_forward.16
= control target key start
LH: loop header
LB: loop body
LE: loop exit
PB: predicated region body
PF: predicated region fallthrough
CT: control target
= control target key end

     0   :  { %vm48_vm0 = vcmask 261120   ;;  %s1204_s1 = inlined_call_operand.vmem [shape: f32[32,1024], index: 1, kind: input, shape index: {}]   ;;  %s1205_s0 = inlined_call_operand.vmem [shape: f32[16,32], index: 0, kind: input, shape index: {}]   ;;  %s1206_s2 = inlined_call_operand.vmem [shape: f32[1024,32], index: 2, kind: input, shape index: {}]   ;;  %s1207_s3 = inlined_call_operand.vmem [shape: f32[16,32], index: 3, kind: output, shape index: {}]  }
   0x1   :  { %v40_v0 = vld [vmem:[%s1204_s1 + $0xc0] sm:$0xff]  ;;  %v42_v1 = vld [vmem:[%s1204_s1 + $0xd0] sm:$0xff]  ;;  %v41_v3 = vld [vmem:[%s1204_s1 + $0xc8] sm:$0xff] }
   0x2   :  { %v32_v2 = vld [vmem:[%s1204_s1 + $0x80] sm:$0xff]  ;;  %67 = vmatpush.msra.mxu0 %v40_v0  ;;  %113 = vmatpush.msra.mxu2 %v42_v1  ;;  %v34_v4 = vld [vmem:[%s1204_s1 + $0x90] sm:$0xff]  ;;  %v43_v5 = vld [vmem:[%s1204_s1 + $0xd8] sm:$0xff] }
   0x3   :  { %90 = vmatpush.msra.mxu1 %v41_v3  ;;  %136 = vmatpush.msra.mxu3 %v43_v5  ;;  %v24_v6 = vld [vmem:[%s1204_s1 + $0x40] sm:$0xff]  ;;  %v33_v7 = vld [vmem:[%s1204_s1 + $0x88] sm:$0xff]  ;;  %v26_v8 = vld [vmem:[%s1204_s1 + $0x50] sm:$0xff] }
   0x4   :  { %68 = vmatpush.msra.mxu0 %v32_v2  ;;  %114 = vmatpush.msra.mxu2 %v34_v4  ;;  %v35_v9 = vld [vmem:[%s1204_s1 + $0x98] sm:$0xff]  ;;  %v25_v10 = vld [vmem:[%s1204_s1 + $0x48] sm:$0xff]  ;;  %v16_v11 = vld [vmem:[%s1204_s1] sm:$0xff] }
   0x5   :  { %91 = vmatpush.msra.mxu1 %v33_v7  ;;  %137 = vmatpush.msra.mxu3 %v35_v9  ;;  %v18_v12 = vld [vmem:[%s1204_s1 + $0x10] sm:$0xff]  ;;  %v27_v13 = vld [vmem:[%s1204_s1 + $0x58] sm:$0xff]  ;;  %v713_v14 = vld [vmem:[%s1205_s0] sm:$0xff] }
   0x6   :  { %69 = vmatpush.msra.mxu0 %v24_v6  ;;  %115 = vmatpush.msra.mxu2 %v26_v8  ;;  %v46_v15 = vld [vmem:[%s1204_s1 + $0xf0] sm:$0xff]  ;;  %v17_v16 = vld [vmem:[%s1204_s1 + $0x8] sm:$0xff]  ;;  %v19_v17 = vld [vmem:[%s1204_s1 + $0x18] sm:$0xff] }
   0x7   :  { %92 = vmatpush.msra.mxu1 %v25_v10  ;;  %138 = vmatpush.msra.mxu3 %v27_v13  ;;  %v38_v18 = vld [vmem:[%s1204_s1 + $0xb0] sm:$0xff]  ;;  %v47_v19 = vld [vmem:[%s1204_s1 + $0xf8] sm:$0xff]  ;;  %v44_v20 = vld [vmem:[%s1204_s1 + $0xe0] sm:$0xff] }
   0x8   :  { %70 = vmatpush.msra.mxu0 %v16_v11  ;;  %116 = vmatpush.msra.mxu2 %v18_v12  ;;  %v30_v21 = vld [vmem:[%s1204_s1 + $0x70] sm:$0xff]  ;;  %v45_v22 = vld [vmem:[%s1204_s1 + $0xe8] sm:$0xff]  ;;  %v39_v23 = vld [vmem:[%s1204_s1 + $0xb8] sm:$0xff] }
   0x9   :  { %624 = vmatmul.msk.f32.vlgmr.msra.gmra.mxu0 %vm48_vm0, %v713_v14  ;;  %628 = vmatmul.msk.f32.vlgmr.msra.gmra.mxu2 %vm48_vm0, %v713_v14  ;;  %v36_v24 = vld [vmem:[%s1204_s1 + $0xa0] sm:$0xff]  ;;  %v22_v25 = vld [vmem:[%s1204_s1 + $0x30] sm:$0xff]  ;;  %v37_v26 = vld [vmem:[%s1204_s1 + $0xa8] sm:$0xff] }
   0xa   :  { %205 = vmatpush.msrb.mxu2 %v46_v15  ;;  %93 = vmatpush.msra.mxu1 %v17_v16  ;;  %v762_v27 = vld [vmem:[%s1205_s0 + $0x8] sm:$0xff]  ;;  %v31_v28 = vld [vmem:[%s1204_s1 + $0x78] sm:$0xff]  ;;  %v28_v29 = vld [vmem:[%s1204_s1 + $0x60] sm:$0xff] }
   0xb   :  { %139 = vmatpush.msra.mxu3 %v19_v17  ;;  %626 = vmatmul.msk.f32.vlgmr.msra.gmra.mxu1 %vm48_vm0, %v713_v14  ;;  %v302_v30 = vld [vmem:[%s1206_s2 + $0x178] sm:$0xff]  ;;  %v20_v31 = vld [vmem:[%s1204_s1 + $0x20] sm:$0xff]  ;;  %v29_v33 = vld [vmem:[%s1204_s1 + $0x68] sm:$0xff] }
   0xc   :  { %630 = vmatmul.msk.f32.vlgmr.msra.gmra.mxu3 %vm48_vm0, %v713_v14  ;;  %206 = vmatpush.msrb.mxu2 %v38_v18  ;;  %v23_v32 = vld [vmem:[%s1204_s1 + $0x38] sm:$0xff]  ;;  %v301_v35 = vld [vmem:[%s1206_s2 + $0x170] sm:$0xff]  ;;  %v21_v36 = vld [vmem:[%s1204_s1 + $0x28] sm:$0xff] }
   0xd   :  { %228 = vmatpush.msrb.mxu3 %v47_v19  ;;  %159 = vmatpush.msrb.mxu0 %v44_v20  ;;  %v270_v34 = vld [vmem:[%s1206_s2 + $0x78] sm:$0xff]  ;;  %v269_v38 = vld [vmem:[%s1206_s2 + $0x70] sm:$0xff]  ;;  %v268_v40 = vld [vmem:[%s1206_s2 + $0x68] sm:$0xff] }
   0xe   :  { %207 = vmatpush.msrb.mxu2 %v30_v21  ;;  %182 = vmatpush.msrb.mxu1 %v45_v22  ;;  %v318_v37 = vld [vmem:[%s1206_s2 + $0x1f8] sm:$0xff]  ;;  %v285_v41 = vld [vmem:[%s1206_s2 + $0xf0] sm:$0xff]  ;;  %v300_v42 = vld [vmem:[%s1206_s2 + $0x168] sm:$0xff] }
   0xf   :  { %229 = vmatpush.msrb.mxu3 %v39_v23  ;;  %160 = vmatpush.msrb.mxu0 %v36_v24  ;;  %v286_v39 = vld [vmem:[%s1206_s2 + $0xf8] sm:$0xff]  ;;  %v267_v43 = vld [vmem:[%s1206_s2 + $0x60] sm:$0xff]  ;;  %v284_v44 = vld [vmem:[%s1206_s2 + $0xe8] sm:$0xff] }
  0x10   :  { %208 = vmatpush.msrb.mxu2 %v22_v25  ;;  %183 = vmatpush.msrb.mxu1 %v37_v26  ;;  %v317_v45 = vld [vmem:[%s1206_s2 + $0x1f0] sm:$0xff]  ;;  %v266_v46 = vld [vmem:[%s1206_s2 + $0x58] sm:$0xff]  ;;  %v299_v47 = vld [vmem:[%s1206_s2 + $0x160] sm:$0xff] }
  0x11   :  { %625 = vmatmul.msk.f32.gmra.mxu0 %vm48_vm0, %v762_v27  ;;  %629 = vmatmul.msk.f32.gmra.mxu2 %vm48_vm0, %v762_v27  ;;  %v283_v48 = vld [vmem:[%s1206_s2 + $0xe0] sm:$0xff]  ;;  %v316_v49 = vld [vmem:[%s1206_s2 + $0x1e8] sm:$0xff]  ;;  %v265_v50 = vld [vmem:[%s1206_s2 + $0x50] sm:$0xff] }
  0x12   :  { %230 = vmatpush.msrb.mxu3 %v31_v28  ;;  %161 = vmatpush.msrb.mxu0 %v28_v29  ;;  %v298_v51 = vld [vmem:[%s1206_s2 + $0x158] sm:$0xff]  ;;  %v264_v53 = vld [vmem:[%s1206_s2 + $0x48] sm:$0xff]  ;;  %v315_v54 = vld [vmem:[%s1206_s2 + $0x1e0] sm:$0xff] }
  0x13   :  { %627 = vmatmul.msk.f32.gmra.mxu1 %vm48_vm0, %v762_v27  ;;  %429 = vmatpush.msra.mxu2 %v302_v30  ;;  %v282_v52 = vld [vmem:[%s1206_s2 + $0xd8] sm:$0xff]  ;;  %v281_v55 = vld [vmem:[%s1206_s2 + $0xd0] sm:$0xff]  ;;  %v263_v56 = vld [vmem:[%s1206_s2 + $0x40] sm:$0xff] }
  0x14   :  { %631 = vmatmul.msk.f32.gmra.mxu3 %vm48_vm0, %v762_v27  ;;  %162 = vmatpush.msrb.mxu0 %v20_v31  ;;  %v297_v57 = vld [vmem:[%s1206_s2 + $0x150] sm:$0xff]  ;;  %v280_v58 = vld [vmem:[%s1206_s2 + $0xc8] sm:$0xff]  ;;  %v314_v59 = vld [vmem:[%s1206_s2 + $0x1d8] sm:$0xff] }
  0x15   :  { %231 = vmatpush.msrb.mxu3 %v23_v32  ;;  %184 = vmatpush.msrb.mxu1 %v29_v33  ;;  %v262_v60 = vld [vmem:[%s1206_s2 + $0x38] sm:$0xff]  ;;  %v296_v61 = vld [vmem:[%s1206_s2 + $0x148] sm:$0xff]  ;;  %v279_v62 = vld [vmem:[%s1206_s2 + $0xc0] sm:$0xff] }
  0x16   :  { %383 = vmatpush.msra.mxu0 %v270_v34  ;;  %430 = vmatpush.msra.mxu2 %v301_v35  ;;  %v313_v63 = vld [vmem:[%s1206_s2 + $0x1d0] sm:$0xff]  ;;  %v295_v1 = vld [vmem:[%s1206_s2 + $0x140] sm:$0xff]  ;;  %v278_v2 = vld [vmem:[%s1206_s2 + $0xb8] sm:$0xff] }
  0x17   :  { %185 = vmatpush.msrb.mxu1 %v21_v36  ;;  %452 = vmatpush.msra.mxu3 %v318_v37  ;;  %v261_v0 = vld [vmem:[%s1206_s2 + $0x30] sm:$0xff]  ;;  %v312_v3 = vld [vmem:[%s1206_s2 + $0x1c8] sm:$0xff]  ;;  %v294_v5 = vld [vmem:[%s1206_s2 + $0x138] sm:$0xff] }
  0x18   :  { %384 = vmatpush.msra.mxu0 %v269_v38  ;;  %431 = vmatpush.msra.mxu2 %v300_v42  ;;  %v260_v4 = vld [vmem:[%s1206_s2 + $0x28] sm:$0xff]  ;;  %v277_v6 = vld [vmem:[%s1206_s2 + $0xb0] sm:$0xff]  ;;  %v311_v7 = vld [vmem:[%s1206_s2 + $0x1c0] sm:$0xff] }
  0x19   :  { %406 = vmatpush.msra.mxu1 %v286_v39  ;;  %632 = vmatmul.msk.f32.vlgmr.msrb.gmra.mxu0 %vm48_vm0, %v713_v14  ;;  %v259_v8 = vld [vmem:[%s1206_s2 + $0x20] sm:$0xff]  ;;  %v293_v9 = vld [vmem:[%s1206_s2 + $0x130] sm:$0xff]  ;;  %v276_v10 = vld [vmem:[%s1206_s2 + $0xa8] sm:$0xff] }
  0x1a   :  { %636 = vmatmul.msk.f32.vlgmr.msrb.gmra.mxu2 %vm48_vm0, %v713_v14  ;;  %385 = vmatpush.msra.mxu0 %v268_v40  ;;  %v310_v11 = vld [vmem:[%s1206_s2 + $0x1b8] sm:$0xff]  ;;  %v292_v13 = vld [vmem:[%s1206_s2 + $0x128] sm:$0xff]  ;;  %v275_v15 = vld [vmem:[%s1206_s2 + $0xa0] sm:$0xff] }
  0x1b   :  { %407 = vmatpush.msra.mxu1 %v285_v41  ;;  %453 = vmatpush.msra.mxu3 %v317_v45  ;;  %v258_v12 = vld [vmem:[%s1206_s2 + $0x18] sm:$0xff]  ;;  %v309_v16 = vld [vmem:[%s1206_s2 + $0x1b0] sm:$0xff]  ;;  %v291_v18 = vld [vmem:[%s1206_s2 + $0x120] sm:$0xff] }
  0x1c   :  { %634 = vmatmul.msk.f32.vlgmr.msrb.gmra.mxu1 %vm48_vm0, %v713_v14  ;;  %638 = vmatmul.msk.f32.vlgmr.msrb.gmra.mxu3 %vm48_vm0, %v713_v14  ;;  %v257_v17 = vld [vmem:[%s1206_s2 + $0x10] sm:$0xff]  ;;  %v274_v19 = vld [vmem:[%s1206_s2 + $0x98] sm:$0xff]  ;;  %v308_v20 = vld [vmem:[%s1206_s2 + $0x1a8] sm:$0xff] }
  0x1d   :  { %386 = vmatpush.msra.mxu0 %v267_v43  ;;  %408 = vmatpush.msra.mxu1 %v284_v44  ;;  %v256_v21 = vld [vmem:[%s1206_s2 + $0x8] sm:$0xff]  ;;  %v290_v22 = vld [vmem:[%s1206_s2 + $0x118] sm:$0xff]  ;;  %v273_v23 = vld [vmem:[%s1206_s2 + $0x90] sm:$0xff] }
  0x1e   :  { %432 = vmatpush.msra.mxu2 %v299_v47  ;;  %454 = vmatpush.msra.mxu3 %v316_v49  ;;  %v307_v24 = vld [vmem:[%s1206_s2 + $0x1a0] sm:$0xff]  ;;  %v289_v26 = vld [vmem:[%s1206_s2 + $0x110] sm:$0xff]  ;;  %v272_v28 = vld [vmem:[%s1206_s2 + $0x88] sm:$0xff] }
  0x1f   :  { %387 = vmatpush.msra.mxu0 %v266_v46  ;;  %409 = vmatpush.msra.mxu1 %v283_v48  ;;  %v255_v25 = vld [vmem:[%s1206_s2] sm:$0xff]  ;;  %v334_v29 = vld [vmem:[%s1206_s2 + $0x278] sm:$0xff]  ;;  %v288_v31 = vld [vmem:[%s1206_s2 + $0x108] sm:$0xff] }
  0x20   :  { %433 = vmatpush.msra.mxu2 %v298_v51  ;;  %455 = vmatpush.msra.mxu3 %v315_v54  ;;  %v306_v30 = vld [vmem:[%s1206_s2 + $0x198] sm:$0xff]  ;;  %v271_v32 = vld [vmem:[%s1206_s2 + $0x80] sm:$0xff]  ;;  %v333_v33 = vld [vmem:[%s1206_s2 + $0x270] sm:$0xff] }
  0x21   :  { %388 = vmatpush.msra.mxu0 %v265_v50  ;;  %410 = vmatpush.msra.mxu1 %v282_v52  ;;  %v350_v34 = vld [vmem:[%s1206_s2 + $0x2f8] sm:$0xff]  ;;  %v305_v35 = vld [vmem:[%s1206_s2 + $0x190] sm:$0xff]  ;;  %v332_v36 = vld [vmem:[%s1206_s2 + $0x268] sm:$0xff] }
  0x22   :  { %633 = vmatmul.msk.f32.gmra.mxu0 %vm48_vm0, %v762_v27  ;;  %637 = vmatmul.msk.f32.gmra.mxu2 %vm48_vm0, %v762_v27  ;;  %v287_v37 = vld [vmem:[%s1206_s2 + $0x100] sm:$0xff]  ;;  %v349_v38 = vld [vmem:[%s1206_s2 + $0x2f0] sm:$0xff]  ;;  %v304_v39 = vld [vmem:[%s1206_s2 + $0x188] sm:$0xff] }
  0x23   :  { %389 = vmatpush.msra.mxu0 %v264_v53  ;;  %411 = vmatpush.msra.mxu1 %v281_v55  ;;  %v331_v40 = vld [vmem:[%s1206_s2 + $0x260] sm:$0xff]  ;;  %v366_v41 = vld [vmem:[%s1206_s2 + $0x378] sm:$0xff]  ;;  %v348_v42 = vld [vmem:[%s1206_s2 + $0x2e8] sm:$0xff] }
  0x24   :  { %635 = vmatmul.msk.f32.gmra.mxu1 %vm48_vm0, %v762_v27  ;;  %639 = vmatmul.msk.f32.gmra.mxu3 %vm48_vm0, %v762_v27  ;;  %v303_v43 = vld [vmem:[%s1206_s2 + $0x180] sm:$0xff]  ;;  %v330_v44 = vld [vmem:[%s1206_s2 + $0x258] sm:$0xff]  ;;  %v365_v45 = vld [vmem:[%s1206_s2 + $0x370] sm:$0xff] }
  0x25   :  { %390 = vmatpush.msra.mxu0 %v263_v56  ;;  %434 = vmatpush.msra.mxu2 %v297_v57  ;;  %v347_v46 = vld [vmem:[%s1206_s2 + $0x2e0] sm:$0xff]  ;;  %v382_v47 = vld [vmem:[%s1206_s2 + $0x3f8] sm:$0xff]  ;;  %v329_v48 = vld [vmem:[%s1206_s2 + $0x250] sm:$0xff] }
  0x26   :  { %412 = vmatpush.msra.mxu1 %v280_v58  ;;  %456 = vmatpush.msra.mxu3 %v314_v59  ;;  %v364_v49 = vld [vmem:[%s1206_s2 + $0x368] sm:$0xff]  ;;  %v346_v50 = vld [vmem:[%s1206_s2 + $0x2d8] sm:$0xff]  ;;  %v381_v51 = vld [vmem:[%s1206_s2 + $0x3f0] sm:$0xff] }
  0x27   :  { %391 = vmatpush.msra.mxu0 %v262_v60  ;;  %435 = vmatpush.msra.mxu2 %v296_v61  ;;  %v328_v52 = vld [vmem:[%s1206_s2 + $0x248] sm:$0xff]  ;;  %v345_v53 = vld [vmem:[%s1206_s2 + $0x2d0] sm:$0xff]  ;;  %v363_v54 = vld [vmem:[%s1206_s2 + $0x360] sm:$0xff] }
  0x28   :  { %413 = vmatpush.msra.mxu1 %v279_v62  ;;  %457 = vmatpush.msra.mxu3 %v313_v63  ;;  %v380_v55 = vld [vmem:[%s1206_s2 + $0x3e8] sm:$0xff]  ;;  %v327_v56 = vld [vmem:[%s1206_s2 + $0x240] sm:$0xff]  ;;  %v362_v58 = vld [vmem:[%s1206_s2 + $0x358] sm:$0xff] }
  0x29   :  { %392 = vmatpush.msra.mxu0 %v261_v0  ;;  %436 = vmatpush.msra.mxu2 %v295_v1  ;;  %v344_v57 = vld [vmem:[%s1206_s2 + $0x2c8] sm:$0xff]  ;;  %v379_v59 = vld [vmem:[%s1206_s2 + $0x3e0] sm:$0xff]  ;;  %v326_v60 = vld [vmem:[%s1206_s2 + $0x238] sm:$0xff] }
  0x2a   :  { %414 = vmatpush.msra.mxu1 %v278_v2  ;;  %458 = vmatpush.msra.mxu3 %v312_v3  ;;  %v343_v61 = vld [vmem:[%s1206_s2 + $0x2c0] sm:$0xff]  ;;  %v361_v62 = vld [vmem:[%s1206_s2 + $0x350] sm:$0xff]  ;;  %v378_v63 = vld [vmem:[%s1206_s2 + $0x3d8] sm:$0xff] }
  0x2b   :  { %393 = vmatpush.msra.mxu0 %v260_v4  ;;  %437 = vmatpush.msra.mxu2 %v294_v5  ;;  %v325_v0 = vld [vmem:[%s1206_s2 + $0x230] sm:$0xff]  ;;  %v342_v1 = vld [vmem:[%s1206_s2 + $0x2b8] sm:$0xff]  ;;  %v360_v2 = vld [vmem:[%s1206_s2 + $0x348] sm:$0xff] }
  0x2c   :  { %415 = vmatpush.msra.mxu1 %v277_v6  ;;  %459 = vmatpush.msra.mxu3 %v311_v7  ;;  %v377_v3 = vld [vmem:[%s1206_s2 + $0x3d0] sm:$0xff]  ;;  %v324_v4 = vld [vmem:[%s1206_s2 + $0x228] sm:$0xff]  ;;  %v359_v6 = vld [vmem:[%s1206_s2 + $0x340] sm:$0xff] }
  0x2d   :  { %394 = vmatpush.msra.mxu0 %v259_v8  ;;  %438 = vmatpush.msra.mxu2 %v293_v9  ;;  %v341_v5 = vld [vmem:[%s1206_s2 + $0x2b0] sm:$0xff]  ;;  %v376_v7 = vld [vmem:[%s1206_s2 + $0x3c8] sm:$0xff]  ;;  %v323_v8 = vld [vmem:[%s1206_s2 + $0x220] sm:$0xff] }
  0x2e   :  { %416 = vmatpush.msra.mxu1 %v276_v10  ;;  %460 = vmatpush.msra.mxu3 %v310_v11  ;;  %v340_v9 = vld [vmem:[%s1206_s2 + $0x2a8] sm:$0xff]  ;;  %v358_v10 = vld [vmem:[%s1206_s2 + $0x338] sm:$0xff]  ;;  %v375_v11 = vld [vmem:[%s1206_s2 + $0x3c0] sm:$0xff] }
  0x2f   :  { %395 = vmatpush.msra.mxu0 %v258_v12  ;;  %439 = vmatpush.msra.mxu2 %v292_v13  ;;  %v322_v12 = vld [vmem:[%s1206_s2 + $0x218] sm:$0xff]  ;;  %v339_v13 = vld [vmem:[%s1206_s2 + $0x2a0] sm:$0xff] }
  0x30   :  { %417 = vmatpush.msra.mxu1 %v275_v15  ;;  %461 = vmatpush.msra.mxu3 %v309_v16  ;;  %v357_v15 = vld [vmem:[%s1206_s2 + $0x330] sm:$0xff]  ;;  %v374_v16 = vld [vmem:[%s1206_s2 + $0x3b8] sm:$0xff] }
  0x31   :  { %396 = vmatpush.msra.mxu0 %v257_v17  ;;  %440 = vmatpush.msra.mxu2 %v291_v18  ;;  %v321_v17 = vld [vmem:[%s1206_s2 + $0x210] sm:$0xff]  ;;  %v338_v18 = vld [vmem:[%s1206_s2 + $0x298] sm:$0xff] }
  0x32   :  { %418 = vmatpush.msra.mxu1 %v274_v19  ;;  %462 = vmatpush.msra.mxu3 %v308_v20  ;;  %v356_v19 = vld [vmem:[%s1206_s2 + $0x328] sm:$0xff]  ;;  %v373_v20 = vld [vmem:[%s1206_s2 + $0x3b0] sm:$0xff] }
  0x33   :  { %397 = vmatpush.msra.mxu0 %v256_v21  ;;  %441 = vmatpush.msra.mxu2 %v290_v22  ;;  %v320_v21 = vld [vmem:[%s1206_s2 + $0x208] sm:$0xff]  ;;  %v337_v22 = vld [vmem:[%s1206_s2 + $0x290] sm:$0xff] }
  0x34   :  { %419 = vmatpush.msra.mxu1 %v273_v23  ;;  %463 = vmatpush.msra.mxu3 %v307_v24  ;;  %v355_v23 = vld [vmem:[%s1206_s2 + $0x320] sm:$0xff]  ;;  %v372_v24 = vld [vmem:[%s1206_s2 + $0x3a8] sm:$0xff] }
  0x35   :  { %398 = vmatpush.msra.mxu0 %v255_v25  ;;  %442 = vmatpush.msra.mxu2 %v289_v26  ;;  %v319_v25 = vld [vmem:[%s1206_s2 + $0x200] sm:$0xff]  ;;  %v336_v26 = vld [vmem:[%s1206_s2 + $0x288] sm:$0xff] }
  0x36   :  { %420 = vmatpush.msra.mxu1 %v272_v28  ;;  %464 = vmatpush.msra.mxu3 %v306_v30  ;;  %v354_v28 = vld [vmem:[%s1206_s2 + $0x318] sm:$0xff]  ;;  %v335_v30 = vld [vmem:[%s1206_s2 + $0x280] sm:$0xff] }
  0x37   :  { %475 = vmatpush.msrb.mxu0 %v334_v29  ;;  %443 = vmatpush.msra.mxu2 %v288_v31  ;;  %v371_v29 = vld [vmem:[%s1206_s2 + $0x3a0] sm:$0xff]  ;;  %v353_v31 = vld [vmem:[%s1206_s2 + $0x310] sm:$0xff] }
  0x38   :  { %421 = vmatpush.msra.mxu1 %v271_v32  ;;  %465 = vmatpush.msra.mxu3 %v305_v35  ;;  %v370_v32 = vld [vmem:[%s1206_s2 + $0x398] sm:$0xff]  ;;  %v351_v35 = vld [vmem:[%s1206_s2 + $0x300] sm:$0xff] }
  0x39   :  { %476 = vmatpush.msrb.mxu0 %v333_v33  ;;  %444 = vmatpush.msra.mxu2 %v287_v37  ;;  %v352_v33 = vld [vmem:[%s1206_s2 + $0x308] sm:$0xff]  ;;  %v367_v37 = vld [vmem:[%s1206_s2 + $0x380] sm:$0xff] }
  0x3a   :  { %498 = vmatpush.msrb.mxu1 %v350_v34  ;;  %466 = vmatpush.msra.mxu3 %v304_v39  ;;  %v369_v34 = vld [vmem:[%s1206_s2 + $0x390] sm:$0xff] }
  0x3b   :  { %477 = vmatpush.msrb.mxu0 %v332_v36  ;;  %521 = vmatpush.msrb.mxu2 %v366_v41  ;;  %v368_v36 = vld [vmem:[%s1206_s2 + $0x388] sm:$0xff] }
  0x3c   :  { %499 = vmatpush.msrb.mxu1 %v349_v38  ;;  %467 = vmatpush.msra.mxu3 %v303_v43 }
  0x3d   :  { %478 = vmatpush.msrb.mxu0 %v331_v40  ;;  %522 = vmatpush.msrb.mxu2 %v365_v45 }
  0x3e   :  { %500 = vmatpush.msrb.mxu1 %v348_v42  ;;  %544 = vmatpush.msrb.mxu3 %v382_v47 }
  0x3f   :  { %479 = vmatpush.msrb.mxu0 %v330_v44  ;;  %523 = vmatpush.msrb.mxu2 %v364_v49 }
  0x40   :  { %501 = vmatpush.msrb.mxu1 %v347_v46  ;;  %545 = vmatpush.msrb.mxu3 %v381_v51 }
  0x41   :  { %480 = vmatpush.msrb.mxu0 %v329_v48  ;;  %524 = vmatpush.msrb.mxu2 %v363_v54 }
  0x42   :  { %502 = vmatpush.msrb.mxu1 %v346_v50  ;;  %546 = vmatpush.msrb.mxu3 %v380_v55 }
  0x43   :  { %481 = vmatpush.msrb.mxu0 %v328_v52  ;;  %525 = vmatpush.msrb.mxu2 %v362_v58 }
  0x44   :  { %503 = vmatpush.msrb.mxu1 %v345_v53  ;;  %547 = vmatpush.msrb.mxu3 %v379_v59 }
  0x45   :  { %482 = vmatpush.msrb.mxu0 %v327_v56  ;;  %526 = vmatpush.msrb.mxu2 %v361_v62 }
  0x46   :  { %504 = vmatpush.msrb.mxu1 %v344_v57  ;;  %548 = vmatpush.msrb.mxu3 %v378_v63 }
  0x47   :  { %483 = vmatpush.msrb.mxu0 %v326_v60  ;;  %527 = vmatpush.msrb.mxu2 %v360_v2 }
  0x48   :  { %505 = vmatpush.msrb.mxu1 %v343_v61  ;;  %549 = vmatpush.msrb.mxu3 %v377_v3 }
  0x49   :  { %484 = vmatpush.msrb.mxu0 %v325_v0  ;;  %528 = vmatpush.msrb.mxu2 %v359_v6 }
  0x4a   :  { %506 = vmatpush.msrb.mxu1 %v342_v1  ;;  %550 = vmatpush.msrb.mxu3 %v376_v7 }
  0x4b   :  { %485 = vmatpush.msrb.mxu0 %v324_v4  ;;  %529 = vmatpush.msrb.mxu2 %v358_v10 }
  0x4c   :  { %507 = vmatpush.msrb.mxu1 %v341_v5  ;;  %551 = vmatpush.msrb.mxu3 %v375_v11 }
  0x4d   :  { %486 = vmatpush.msrb.mxu0 %v323_v8  ;;  %530 = vmatpush.msrb.mxu2 %v357_v15 }
  0x4e   :  { %508 = vmatpush.msrb.mxu1 %v340_v9  ;;  %552 = vmatpush.msrb.mxu3 %v374_v16 }
  0x4f   :  { %487 = vmatpush.msrb.mxu0 %v322_v12  ;;  %531 = vmatpush.msrb.mxu2 %v356_v19 }
  0x50   :  { %509 = vmatpush.msrb.mxu1 %v339_v13  ;;  %553 = vmatpush.msrb.mxu3 %v373_v20 }
  0x51   :  { %488 = vmatpush.msrb.mxu0 %v321_v17  ;;  %532 = vmatpush.msrb.mxu2 %v355_v23 }
  0x52   :  { %510 = vmatpush.msrb.mxu1 %v338_v18  ;;  %554 = vmatpush.msrb.mxu3 %v372_v24 }
  0x53   :  { %489 = vmatpush.msrb.mxu0 %v320_v21  ;;  %533 = vmatpush.msrb.mxu2 %v354_v28 }
  0x54   :  { %511 = vmatpush.msrb.mxu1 %v337_v22  ;;  %555 = vmatpush.msrb.mxu3 %v371_v29 }
  0x55   :  { %490 = vmatpush.msrb.mxu0 %v319_v25  ;;  %534 = vmatpush.msrb.mxu2 %v353_v31 }
  0x56   :  { %512 = vmatpush.msrb.mxu1 %v336_v26  ;;  %556 = vmatpush.msrb.mxu3 %v370_v32 }
  0x57   :  { %535 = vmatpush.msrb.mxu2 %v352_v33 }
  0x58   :  { %513 = vmatpush.msrb.mxu1 %v335_v30  ;;  %557 = vmatpush.msrb.mxu3 %v369_v34 }
  0x59   :  { %536 = vmatpush.msrb.mxu2 %v351_v35 }
  0x5a   :  { %558 = vmatpush.msrb.mxu3 %v368_v36 }
  0x5c   :  { %559 = vmatpush.msrb.mxu3 %v367_v37 }
  0x86   :  { %v72_v38 = vpop.f32.mrf.mxu0 }
  0x87   :  { %v239_v39 = vmax.f32 %v72_v38, 0.0 }
  0x88   :  { %v95_v40 = vpop.f32.mrf.mxu1 }
  0x89   :  { %v240_v41 = vmax.f32 %v95_v40, 0.0  ;;  %399 = vmatmul.f32.vlgmr.msra.gmra.mxu0 %v239_v39  ;;  %v647_v40 = vmov 32.0  }
  0x8a   :  { %641 = vrcp.f32 %v647_v40 }
  0x8b   :  { %422 = vmatmul.f32.vlgmr.msra.gmra.mxu1 %v240_v41 }
  0x8c   :  { %v118_v42 = vpop.f32.mrf.mxu2 }
  0x8d   :  { %v241_v43 = vmax.f32 %v118_v42, 0.0 }
  0x8e   :  { %v75_v44 = vpop.f32.mrf.mxu0 }
  0x8f   :  { %v247_v45 = vmax.f32 %v75_v44, 0.0  ;;  %v141_v46 = vpop.f32.mrf.mxu3  ;;  %445 = vmatmul.f32.vlgmr.msra.gmra.mxu2 %v241_v43 }
  0x90   :  { %v242_v47 = vmax.f32 %v141_v46, 0.0  ;;  %v98_v48 = vpop.f32.mrf.mxu1  ;;  %v642_v41 = vpop.eup %641 }
  0x91   :  { %v248_v49 = vmax.f32 %v98_v48, 0.0  ;;  %402 = vmatmul.f32.gmra.mxu0 %v247_v45  ;;  %v574_v42 = vmul.f32 32.0, %v642_v41  ;;  %vm578_vm1 = vweird.f32 %v642_v41 }
  0x92   :  { %468 = vmatmul.f32.vlgmr.msra.gmra.mxu3 %v242_v47 }
  0x93   :  { %425 = vmatmul.f32.gmra.mxu1 %v248_v49  ;;  %v575_v43 = vsub.f32 1.0, %v574_v42 }
  0x94   :  { %v121_v50 = vpop.f32.mrf.mxu2 }
  0x95   :  { %v249_v51 = vmax.f32 %v121_v50, 0.0  ;;  %v576_v44 = vmul.f32 %v642_v41, %v575_v43 }
  0x96   :  { %v164_v52 = vpop.f32.mrf.mxu0 }
  0x97   :  { %v144_v53 = vpop.f32.mrf.mxu3  ;;  %v243_v54 = vmax.f32 %v164_v52, 0.0  ;;  %448 = vmatmul.f32.gmra.mxu2 %v249_v51  ;;  %v577_v45 = vadd.f32 %v642_v41, %v576_v44 }
  0x98   :  { %v250_v55 = vmax.f32 %v144_v53, 0.0 }
  0x99   :  { %v187_v56 = vpop.f32.mrf.mxu1  ;;  %491 = vmatmul.f32.vlgmr.msrb.gmra.mxu0 %v243_v54  ;;  %v579_v46 = vsel %vm578_vm1, %v642_v41, %v577_v45 }
  0x9a   :  { %v244_v57 = vmax.f32 %v187_v56, 0.0  ;;  %471 = vmatmul.f32.gmra.mxu3 %v250_v55 }
  0x9c   :  { %514 = vmatmul.f32.vlgmr.msrb.gmra.mxu1 %v244_v57 }
  0x9d   :  { %v210_v58 = vpop.f32.mrf.mxu2 }
  0x9e   :  { %v245_v59 = vmax.f32 %v210_v58, 0.0 }
  0x9f   :  { %v167_v60 = vpop.f32.mrf.mxu0  ;;  %v233_v62 = vpop.f32.mrf.mxu3 }
  0xa0   :  { %v251_v61 = vmax.f32 %v167_v60, 0.0  ;;  %537 = vmatmul.f32.vlgmr.msrb.gmra.mxu2 %v245_v59  ;;  %v246_v63 = vmax.f32 %v233_v62, 0.0 }
  0xa1   :  { %v190_v0 = vpop.f32.mrf.mxu1 }
  0xa2   :  { %v252_v1 = vmax.f32 %v190_v0, 0.0  ;;  %494 = vmatmul.f32.gmra.mxu0 %v251_v61  ;;  %560 = vmatmul.f32.vlgmr.msrb.gmra.mxu3 %v246_v63 }
  0xa4   :  { %517 = vmatmul.f32.gmra.mxu1 %v252_v1 }
  0xa5   :  { %v213_v2 = vpop.f32.mrf.mxu2 }
  0xa6   :  { %v253_v3 = vmax.f32 %v213_v2, 0.0 }
  0xa7   :  { %v236_v4 = vpop.f32.mrf.mxu3 }
  0xa8   :  { %540 = vmatmul.f32.gmra.mxu2 %v253_v3  ;;  %v254_v5 = vmax.f32 %v236_v4, 0.0 }
  0xaa   :  { %563 = vmatmul.f32.gmra.mxu3 %v254_v5 }
 0x106   :  { %v400_v6 = vpop.f32.mrf.mxu0 }
 0x107   :  { %v401_v8 = vadd.f32 %v400_v6, %v713_v14 }
 0x108   :  { %v423_v7 = vpop.f32.mrf.mxu1 }
 0x109   :  { %v424_v10 = vadd.f32 %v423_v7, %v401_v8 }
 0x10e   :  { %v403_v9 = vpop.f32.mrf.mxu0 }
 0x10f   :  { %v404_v13 = vadd.f32 %v403_v9, %v762_v27 }
 0x110   :  { %v426_v11 = vpop.f32.mrf.mxu1 }
 0x111   :  { %v427_v18 = vadd.f32 %v426_v11, %v404_v13 }
 0x112   :  { %v446_v12 = vpop.f32.mrf.mxu2 }
 0x113   :  { %v447_v15 = vadd.f32 %v446_v12, %v424_v10 }
 0x115   :  { %v469_v16 = vpop.f32.mrf.mxu3 }
 0x116   :  { %v492_v17 = vpop.f32.mrf.mxu0  ;;  %v470_v19 = vadd.f32 %v469_v16, %v447_v15 }
 0x118   :  { %v493_v22 = vadd.f32 %v492_v17, %v470_v19 }
 0x119   :  { %v515_v21 = vpop.f32.mrf.mxu1 }
 0x11a   :  { %v449_v20 = vpop.f32.mrf.mxu2  ;;  %v516_v25 = vadd.f32 %v515_v21, %v493_v22 }
 0x11b   :  { %v450_v23 = vadd.f32 %v449_v20, %v427_v18 }
 0x11d   :  { %v472_v24 = vpop.f32.mrf.mxu3 }
 0x11e   :  { %v473_v26 = vadd.f32 %v472_v24, %v450_v23 }
 0x11f   :  { %v495_v28 = vpop.f32.mrf.mxu0 }
 0x120   :  { %v496_v30 = vadd.f32 %v495_v28, %v473_v26 }
 0x121   :  { %v518_v32 = vpop.f32.mrf.mxu1 }
 0x122   :  { %v519_v34 = vadd.f32 %v518_v32, %v496_v30 }
 0x123   :  { %v538_v14 = vpop.f32.mrf.mxu2 }
 0x124   :  { %v539_v29 = vadd.f32 %v538_v14, %v516_v25 }
 0x125   :  { %v561_v31 = vpop.f32.mrf.mxu3 }
 0x126   :  { %v562_v33 = vadd.f32 %v561_v31, %v539_v29 }
 0x128   :  { %v567_v27 = vsel %vm48_vm0, %v562_v33, 0.0 }
 0x129   :  { %568 = vadd.xlane.f32.xlu0 %v567_v27 }
 0x12b   :  { %v541_v35 = vpop.f32.mrf.mxu2 }
 0x12c   :  { %v542_v36 = vadd.f32 %v541_v35, %v519_v34 }
 0x12d   :  { %v564_v37 = vpop.f32.mrf.mxu3 }
 0x12e   :  { %v565_v38 = vadd.f32 %v564_v37, %v542_v36 }
 0x130   :  { %v570_v39 = vsel %vm48_vm0, %v565_v38, 0.0 }
 0x131   :  { %571 = vadd.xlane.f32.xlu0 %v570_v39 }
 0x19c   :  { %v569_v47 = vpop.xlane.xlu0 %568 }
 0x19d   :  { %v580_v48 = vmul.f32 %v579_v46, %v569_v47 }
 0x19f   :  { %v582_v49 = vsub.f32 %v562_v33, %v580_v48 }
 0x1a1   :  { %v584_v50 = vmul.f32 %v582_v49, %v582_v49 }
 0x1a3   :  { %v586_v51 = vsel %vm48_vm0, %v584_v50, 0.0 }
 0x1a4   :  { %587 = vadd.xlane.f32.xlu1 %v586_v51  ;;  %v572_v52 = vpop.xlane.xlu0 %571 }
 0x1a5   :  { %v581_v53 = vmul.f32 %v579_v46, %v572_v52 }
 0x1a7   :  { %v583_v54 = vsub.f32 %v565_v38, %v581_v53 }
 0x1a9   :  { %v585_v55 = vmul.f32 %v583_v54, %v583_v54 }
 0x1ab   :  { %v589_v56 = vsel %vm48_vm0, %v585_v55, 0.0 }
 0x1ac   :  { %590 = vadd.xlane.f32.xlu1 %v589_v56 }
 0x217   :  { %v588_v57 = vpop.xlane.xlu1 %587 }
 0x218   :  { %v592_v58 = vmul.f32 %v588_v57, %v579_v46 }
 0x21a   :  { %v594_v59 = vadd.f32 1e-05, %v592_v58 }
 0x21c   :  { %643 = vrsqrt.f32 %v594_v59  ;;  %vm602_vm3 = vweird.f32 %v594_v59 }
 0x21f   :  { %v591_v60 = vpop.xlane.xlu1 %590 }
 0x220   :  { %v593_v61 = vmul.f32 %v591_v60, %v579_v46 }
 0x222   :  { %v644_v62 = vpop.eup %643  ;;  %v595_v63 = vadd.f32 1e-05, %v593_v61 }
 0x223   :  { %v597_v0 = vmul.f32 %v644_v62, %v594_v59  ;;  %vm603_vm2 = vweird.f32 %v644_v62 }
 0x224   :  { %645 = vrsqrt.f32 %v595_v63  ;;  %vm604_vm4 = vmor %vm602_vm3, %vm603_vm2  ;;  %vm612_vm6 = vweird.f32 %v595_v63 }
 0x225   :  { %v598_v1 = vmul.f32 %v644_v62, %v597_v0 }
 0x227   :  { %v599_v2 = vmul.f32 0.5, %v598_v1 }
 0x229   :  { %v600_v3 = vsub.f32 1.5, %v599_v2 }
 0x22a   :  { %v646_v4 = vpop.eup %645 }
 0x22b   :  { %v601_v5 = vmul.f32 %v644_v62, %v600_v3  ;;  %v607_v6 = vmul.f32 %v646_v4, %v595_v63  ;;  %vm613_vm5 = vweird.f32 %v646_v4 }
 0x22c   :  { %vm614_vm7 = vmor %vm612_vm6, %vm613_vm5 }
 0x22d   :  { %v605_v7 = vsel %vm604_vm4, %v644_v62, %v601_v5  ;;  %v608_v8 = vmul.f32 %v646_v4, %v607_v6 }
 0x22e   :  { %v616_v9 = vmul.f32 %v605_v7, %v582_v49 }
 0x22f   :  { %v609_v10 = vmul.f32 0.5, %v608_v8 }
 0x230   :  { %618 = vst.msk [vmem:[%s1207_s3] sm:$0xff] %vm48_vm0, %v616_v9 }
 0x231   :  { %v610_v11 = vsub.f32 1.5, %v609_v10 }
 0x233   :  { %v611_v12 = vmul.f32 %v646_v4, %v610_v11 }
 0x235   :  { %v615_v13 = vsel %vm614_vm7, %v646_v4, %v611_v12 }
 0x236   :  { %v617_v15 = vmul.f32 %v615_v13, %v583_v54 }
 0x238   :  { %619 = vst.msk [vmem:[%s1207_s3 + $0x8] sm:$0xff] %vm48_vm0, %v617_v15 }

// kernel: decoder_forward.21
= control target key start
LH: loop header
LB: loop body
LE: loop exit
PB: predicated region body
PF: predicated region fallthrough
CT: control target
= control target key end

     0   :  { %vm49_vm0 = vcmask 261120   ;;  %s1248_s0 = inlined_call_operand.vmem [shape: f32[16,32], index: 0, kind: input, shape index: {}]   ;;  %s1249_s1 = inlined_call_operand.vmem [shape: f32[32,1024], index: 1, kind: input, shape index: {}]   ;;  %s1250_s2 = inlined_call_operand.vmem [shape: f32[1024,32], index: 2, kind: input, shape index: {}]   ;;  %s1251_s3 = inlined_call_operand.hbm [shape: f32[16,32], index: 3, kind: output, shape index: {}]  }
   0x1   :  { %v41_v0 = vld [vmem:[%s1249_s1 + $0xc0] sm:$0xff]  ;;  %v43_v1 = vld [vmem:[%s1249_s1 + $0xd0] sm:$0xff]  ;;  %v42_v3 = vld [vmem:[%s1249_s1 + $0xc8] sm:$0xff] }
   0x2   :  { %v33_v2 = vld [vmem:[%s1249_s1 + $0x80] sm:$0xff]  ;;  %68 = vmatpush.msra.mxu0 %v41_v0  ;;  %114 = vmatpush.msra.mxu2 %v43_v1  ;;  %v35_v4 = vld [vmem:[%s1249_s1 + $0x90] sm:$0xff]  ;;  %v44_v5 = vld [vmem:[%s1249_s1 + $0xd8] sm:$0xff] }
   0x3   :  { %91 = vmatpush.msra.mxu1 %v42_v3  ;;  %137 = vmatpush.msra.mxu3 %v44_v5  ;;  %v25_v6 = vld [vmem:[%s1249_s1 + $0x40] sm:$0xff]  ;;  %v34_v7 = vld [vmem:[%s1249_s1 + $0x88] sm:$0xff]  ;;  %v27_v8 = vld [vmem:[%s1249_s1 + $0x50] sm:$0xff] }
   0x4   :  { %69 = vmatpush.msra.mxu0 %v33_v2  ;;  %115 = vmatpush.msra.mxu2 %v35_v4  ;;  %v36_v9 = vld [vmem:[%s1249_s1 + $0x98] sm:$0xff]  ;;  %v26_v10 = vld [vmem:[%s1249_s1 + $0x48] sm:$0xff]  ;;  %v17_v11 = vld [vmem:[%s1249_s1] sm:$0xff] }
   0x5   :  { %92 = vmatpush.msra.mxu1 %v34_v7  ;;  %138 = vmatpush.msra.mxu3 %v36_v9  ;;  %v19_v12 = vld [vmem:[%s1249_s1 + $0x10] sm:$0xff]  ;;  %v28_v13 = vld [vmem:[%s1249_s1 + $0x58] sm:$0xff]  ;;  %v760_v14 = vld [vmem:[%s1248_s0] sm:$0xff] }
   0x6   :  { %70 = vmatpush.msra.mxu0 %v25_v6  ;;  %116 = vmatpush.msra.mxu2 %v27_v8  ;;  %v47_v15 = vld [vmem:[%s1249_s1 + $0xf0] sm:$0xff]  ;;  %v18_v16 = vld [vmem:[%s1249_s1 + $0x8] sm:$0xff]  ;;  %v20_v17 = vld [vmem:[%s1249_s1 + $0x18] sm:$0xff] }
   0x7   :  { %93 = vmatpush.msra.mxu1 %v26_v10  ;;  %139 = vmatpush.msra.mxu3 %v28_v13  ;;  %v39_v18 = vld [vmem:[%s1249_s1 + $0xb0] sm:$0xff]  ;;  %v48_v19 = vld [vmem:[%s1249_s1 + $0xf8] sm:$0xff]  ;;  %v45_v20 = vld [vmem:[%s1249_s1 + $0xe0] sm:$0xff] }
   0x8   :  { %71 = vmatpush.msra.mxu0 %v17_v11  ;;  %117 = vmatpush.msra.mxu2 %v19_v12  ;;  %v31_v21 = vld [vmem:[%s1249_s1 + $0x70] sm:$0xff]  ;;  %v46_v22 = vld [vmem:[%s1249_s1 + $0xe8] sm:$0xff]  ;;  %v40_v23 = vld [vmem:[%s1249_s1 + $0xb8] sm:$0xff] }
   0x9   :  { %639 = vmatmul.msk.f32.vlgmr.msra.gmra.mxu0 %vm49_vm0, %v760_v14  ;;  %643 = vmatmul.msk.f32.vlgmr.msra.gmra.mxu2 %vm49_vm0, %v760_v14  ;;  %v37_v24 = vld [vmem:[%s1249_s1 + $0xa0] sm:$0xff]  ;;  %v23_v25 = vld [vmem:[%s1249_s1 + $0x30] sm:$0xff]  ;;  %v38_v26 = vld [vmem:[%s1249_s1 + $0xa8] sm:$0xff] }
   0xa   :  { %206 = vmatpush.msrb.mxu2 %v47_v15  ;;  %94 = vmatpush.msra.mxu1 %v18_v16  ;;  %v809_v27 = vld [vmem:[%s1248_s0 + $0x8] sm:$0xff]  ;;  %v32_v28 = vld [vmem:[%s1249_s1 + $0x78] sm:$0xff]  ;;  %v29_v29 = vld [vmem:[%s1249_s1 + $0x60] sm:$0xff] }
   0xb   :  { %140 = vmatpush.msra.mxu3 %v20_v17  ;;  %641 = vmatmul.msk.f32.vlgmr.msra.gmra.mxu1 %vm49_vm0, %v760_v14  ;;  %v303_v30 = vld [vmem:[%s1250_s2 + $0x178] sm:$0xff]  ;;  %v21_v31 = vld [vmem:[%s1249_s1 + $0x20] sm:$0xff]  ;;  %v30_v33 = vld [vmem:[%s1249_s1 + $0x68] sm:$0xff] }
   0xc   :  { %645 = vmatmul.msk.f32.vlgmr.msra.gmra.mxu3 %vm49_vm0, %v760_v14  ;;  %207 = vmatpush.msrb.mxu2 %v39_v18  ;;  %v24_v32 = vld [vmem:[%s1249_s1 + $0x38] sm:$0xff]  ;;  %v302_v35 = vld [vmem:[%s1250_s2 + $0x170] sm:$0xff]  ;;  %v22_v36 = vld [vmem:[%s1249_s1 + $0x28] sm:$0xff] }
   0xd   :  { %229 = vmatpush.msrb.mxu3 %v48_v19  ;;  %160 = vmatpush.msrb.mxu0 %v45_v20  ;;  %v271_v34 = vld [vmem:[%s1250_s2 + $0x78] sm:$0xff]  ;;  %v270_v38 = vld [vmem:[%s1250_s2 + $0x70] sm:$0xff]  ;;  %v269_v40 = vld [vmem:[%s1250_s2 + $0x68] sm:$0xff] }
   0xe   :  { %208 = vmatpush.msrb.mxu2 %v31_v21  ;;  %183 = vmatpush.msrb.mxu1 %v46_v22  ;;  %v319_v37 = vld [vmem:[%s1250_s2 + $0x1f8] sm:$0xff]  ;;  %v286_v41 = vld [vmem:[%s1250_s2 + $0xf0] sm:$0xff]  ;;  %v301_v42 = vld [vmem:[%s1250_s2 + $0x168] sm:$0xff] }
   0xf   :  { %230 = vmatpush.msrb.mxu3 %v40_v23  ;;  %161 = vmatpush.msrb.mxu0 %v37_v24  ;;  %v287_v39 = vld [vmem:[%s1250_s2 + $0xf8] sm:$0xff]  ;;  %v268_v43 = vld [vmem:[%s1250_s2 + $0x60] sm:$0xff]  ;;  %v285_v44 = vld [vmem:[%s1250_s2 + $0xe8] sm:$0xff] }
  0x10   :  { %209 = vmatpush.msrb.mxu2 %v23_v25  ;;  %184 = vmatpush.msrb.mxu1 %v38_v26  ;;  %v318_v45 = vld [vmem:[%s1250_s2 + $0x1f0] sm:$0xff]  ;;  %v267_v46 = vld [vmem:[%s1250_s2 + $0x58] sm:$0xff]  ;;  %v300_v47 = vld [vmem:[%s1250_s2 + $0x160] sm:$0xff] }
  0x11   :  { %640 = vmatmul.msk.f32.gmra.mxu0 %vm49_vm0, %v809_v27  ;;  %644 = vmatmul.msk.f32.gmra.mxu2 %vm49_vm0, %v809_v27  ;;  %v284_v48 = vld [vmem:[%s1250_s2 + $0xe0] sm:$0xff]  ;;  %v317_v49 = vld [vmem:[%s1250_s2 + $0x1e8] sm:$0xff]  ;;  %v266_v50 = vld [vmem:[%s1250_s2 + $0x50] sm:$0xff] }
  0x12   :  { %231 = vmatpush.msrb.mxu3 %v32_v28  ;;  %162 = vmatpush.msrb.mxu0 %v29_v29  ;;  %v299_v51 = vld [vmem:[%s1250_s2 + $0x158] sm:$0xff]  ;;  %v265_v53 = vld [vmem:[%s1250_s2 + $0x48] sm:$0xff]  ;;  %v316_v54 = vld [vmem:[%s1250_s2 + $0x1e0] sm:$0xff] }
  0x13   :  { %642 = vmatmul.msk.f32.gmra.mxu1 %vm49_vm0, %v809_v27  ;;  %430 = vmatpush.msra.mxu2 %v303_v30  ;;  %v283_v52 = vld [vmem:[%s1250_s2 + $0xd8] sm:$0xff]  ;;  %v282_v55 = vld [vmem:[%s1250_s2 + $0xd0] sm:$0xff]  ;;  %v264_v56 = vld [vmem:[%s1250_s2 + $0x40] sm:$0xff] }
  0x14   :  { %646 = vmatmul.msk.f32.gmra.mxu3 %vm49_vm0, %v809_v27  ;;  %163 = vmatpush.msrb.mxu0 %v21_v31  ;;  %v298_v57 = vld [vmem:[%s1250_s2 + $0x150] sm:$0xff]  ;;  %v281_v58 = vld [vmem:[%s1250_s2 + $0xc8] sm:$0xff]  ;;  %v315_v59 = vld [vmem:[%s1250_s2 + $0x1d8] sm:$0xff] }
  0x15   :  { %232 = vmatpush.msrb.mxu3 %v24_v32  ;;  %185 = vmatpush.msrb.mxu1 %v30_v33  ;;  %v263_v60 = vld [vmem:[%s1250_s2 + $0x38] sm:$0xff]  ;;  %v297_v61 = vld [vmem:[%s1250_s2 + $0x148] sm:$0xff]  ;;  %v280_v62 = vld [vmem:[%s1250_s2 + $0xc0] sm:$0xff] }
  0x16   :  { %384 = vmatpush.msra.mxu0 %v271_v34  ;;  %431 = vmatpush.msra.mxu2 %v302_v35  ;;  %v314_v63 = vld [vmem:[%s1250_s2 + $0x1d0] sm:$0xff]  ;;  %v296_v1 = vld [vmem:[%s1250_s2 + $0x140] sm:$0xff]  ;;  %v279_v2 = vld [vmem:[%s1250_s2 + $0xb8] sm:$0xff] }
  0x17   :  { %186 = vmatpush.msrb.mxu1 %v22_v36  ;;  %453 = vmatpush.msra.mxu3 %v319_v37  ;;  %v262_v0 = vld [vmem:[%s1250_s2 + $0x30] sm:$0xff]  ;;  %v313_v3 = vld [vmem:[%s1250_s2 + $0x1c8] sm:$0xff] }
  0x18   :  { %385 = vmatpush.msra.mxu0 %v270_v38  ;;  %432 = vmatpush.msra.mxu2 %v301_v42 }
  0x19   :  { %407 = vmatpush.msra.mxu1 %v287_v39  ;;  %647 = vmatmul.msk.f32.vlgmr.msrb.gmra.mxu0 %vm49_vm0, %v760_v14 }
  0x1a   :  { %651 = vmatmul.msk.f32.vlgmr.msrb.gmra.mxu2 %vm49_vm0, %v760_v14  ;;  %386 = vmatpush.msra.mxu0 %v269_v40 }
  0x1b   :  { %408 = vmatpush.msra.mxu1 %v286_v41  ;;  %454 = vmatpush.msra.mxu3 %v318_v45 }
  0x1c   :  { %649 = vmatmul.msk.f32.vlgmr.msrb.gmra.mxu1 %vm49_vm0, %v760_v14  ;;  %653 = vmatmul.msk.f32.vlgmr.msrb.gmra.mxu3 %vm49_vm0, %v760_v14 }
  0x1d   :  { %387 = vmatpush.msra.mxu0 %v268_v43  ;;  %409 = vmatpush.msra.mxu1 %v285_v44 }
  0x1e   :  { %433 = vmatpush.msra.mxu2 %v300_v47  ;;  %455 = vmatpush.msra.mxu3 %v317_v49 }
  0x1f   :  { %388 = vmatpush.msra.mxu0 %v267_v46  ;;  %410 = vmatpush.msra.mxu1 %v284_v48 }
  0x20   :  { %434 = vmatpush.msra.mxu2 %v299_v51  ;;  %456 = vmatpush.msra.mxu3 %v316_v54 }
  0x21   :  { %389 = vmatpush.msra.mxu0 %v266_v50  ;;  %411 = vmatpush.msra.mxu1 %v283_v52 }
  0x22   :  { %648 = vmatmul.msk.f32.gmra.mxu0 %vm49_vm0, %v809_v27  ;;  %652 = vmatmul.msk.f32.gmra.mxu2 %vm49_vm0, %v809_v27 }
  0x23   :  { %390 = vmatpush.msra.mxu0 %v265_v53  ;;  %412 = vmatpush.msra.mxu1 %v282_v55 }
  0x24   :  { %650 = vmatmul.msk.f32.gmra.mxu1 %vm49_vm0, %v809_v27  ;;  %654 = vmatmul.msk.f32.gmra.mxu3 %vm49_vm0, %v809_v27 }
  0x25   :  { %391 = vmatpush.msra.mxu0 %v264_v56  ;;  %435 = vmatpush.msra.mxu2 %v298_v57 }
  0x26   :  { %413 = vmatpush.msra.mxu1 %v281_v58  ;;  %457 = vmatpush.msra.mxu3 %v315_v59 }
  0x27   :  { %392 = vmatpush.msra.mxu0 %v263_v60  ;;  %436 = vmatpush.msra.mxu2 %v297_v61 }
  0x28   :  { %8 = vsyncpa [#allocation3], 0  ;;  %414 = vmatpush.msra.mxu1 %v280_v62  ;;  %458 = vmatpush.msra.mxu3 %v314_v63  ;;  %v261_v4 = vld [vmem:[%s1250_s2 + $0x28] sm:$0xff]  ;;  %v295_v5 = vld [vmem:[%s1250_s2 + $0x138] sm:$0xff]  ;;  %s627_s23 = sshll.u32 %s1251_s3, 4  ;;  %s693_s24 = smov 128   ;;  %s628_s23 = int_to_ptr.hbm [resolvable:$true] %s627_s23 }
  0x29   :  { %393 = vmatpush.msra.mxu0 %v262_v0  ;;  %v278_v6 = vld [vmem:[%s1250_s2 + $0xb0] sm:$0xff]  ;;  %437 = vmatpush.msra.mxu2 %v296_v1  ;;  %v312_v7 = vld [vmem:[%s1250_s2 + $0x1c0] sm:$0xff]  ;;  %v277_v10 = vld [vmem:[%s1250_s2 + $0xa8] sm:$0xff]  ;;  %s694_s25 = smov 8  }
  0x2a   :  { %415 = vmatpush.msra.mxu1 %v279_v2  ;;  %459 = vmatpush.msra.mxu3 %v313_v3  ;;  %v260_v8 = vld [vmem:[%s1250_s2 + $0x20] sm:$0xff]  ;;  %v294_v9 = vld [vmem:[%s1250_s2 + $0x130] sm:$0xff]  ;;  %v311_v11 = vld [vmem:[%s1250_s2 + $0x1b8] sm:$0xff] }
  0x2b   :  { %394 = vmatpush.msra.mxu0 %v261_v4  ;;  %438 = vmatpush.msra.mxu2 %v295_v5  ;;  %v259_v12 = vld [vmem:[%s1250_s2 + $0x18] sm:$0xff]  ;;  %v293_v13 = vld [vmem:[%s1250_s2 + $0x128] sm:$0xff]  ;;  %v276_v15 = vld [vmem:[%s1250_s2 + $0xa0] sm:$0xff] }
  0x2c   :  { %416 = vmatpush.msra.mxu1 %v278_v6  ;;  %460 = vmatpush.msra.mxu3 %v312_v7  ;;  %v310_v16 = vld [vmem:[%s1250_s2 + $0x1b0] sm:$0xff]  ;;  %v292_v18 = vld [vmem:[%s1250_s2 + $0x120] sm:$0xff]  ;;  %v275_v19 = vld [vmem:[%s1250_s2 + $0x98] sm:$0xff] }
  0x2d   :  { %395 = vmatpush.msra.mxu0 %v260_v8  ;;  %439 = vmatpush.msra.mxu2 %v294_v9  ;;  %v258_v17 = vld [vmem:[%s1250_s2 + $0x10] sm:$0xff]  ;;  %v309_v20 = vld [vmem:[%s1250_s2 + $0x1a8] sm:$0xff]  ;;  %v291_v22 = vld [vmem:[%s1250_s2 + $0x118] sm:$0xff] }
  0x2e   :  { %417 = vmatpush.msra.mxu1 %v277_v10  ;;  %461 = vmatpush.msra.mxu3 %v311_v11  ;;  %v257_v21 = vld [vmem:[%s1250_s2 + $0x8] sm:$0xff]  ;;  %v274_v23 = vld [vmem:[%s1250_s2 + $0x90] sm:$0xff]  ;;  %v308_v24 = vld [vmem:[%s1250_s2 + $0x1a0] sm:$0xff] }
  0x2f   :  { %396 = vmatpush.msra.mxu0 %v259_v12  ;;  %440 = vmatpush.msra.mxu2 %v293_v13  ;;  %v256_v25 = vld [vmem:[%s1250_s2] sm:$0xff]  ;;  %v290_v26 = vld [vmem:[%s1250_s2 + $0x110] sm:$0xff]  ;;  %v273_v28 = vld [vmem:[%s1250_s2 + $0x88] sm:$0xff] }
  0x30   :  { %418 = vmatpush.msra.mxu1 %v276_v15  ;;  %462 = vmatpush.msra.mxu3 %v310_v16  ;;  %v335_v29 = vld [vmem:[%s1250_s2 + $0x278] sm:$0xff]  ;;  %v289_v31 = vld [vmem:[%s1250_s2 + $0x108] sm:$0xff]  ;;  %v272_v32 = vld [vmem:[%s1250_s2 + $0x80] sm:$0xff] }
  0x31   :  { %397 = vmatpush.msra.mxu0 %v258_v17  ;;  %441 = vmatpush.msra.mxu2 %v292_v18  ;;  %v307_v30 = vld [vmem:[%s1250_s2 + $0x198] sm:$0xff]  ;;  %v334_v33 = vld [vmem:[%s1250_s2 + $0x270] sm:$0xff]  ;;  %v333_v36 = vld [vmem:[%s1250_s2 + $0x268] sm:$0xff] }
  0x32   :  { %419 = vmatpush.msra.mxu1 %v275_v19  ;;  %463 = vmatpush.msra.mxu3 %v309_v20  ;;  %v351_v34 = vld [vmem:[%s1250_s2 + $0x2f8] sm:$0xff]  ;;  %v306_v35 = vld [vmem:[%s1250_s2 + $0x190] sm:$0xff]  ;;  %v288_v37 = vld [vmem:[%s1250_s2 + $0x100] sm:$0xff] }
  0x33   :  { %398 = vmatpush.msra.mxu0 %v257_v21  ;;  %442 = vmatpush.msra.mxu2 %v291_v22  ;;  %v350_v38 = vld [vmem:[%s1250_s2 + $0x2f0] sm:$0xff]  ;;  %v305_v39 = vld [vmem:[%s1250_s2 + $0x188] sm:$0xff]  ;;  %v332_v40 = vld [vmem:[%s1250_s2 + $0x260] sm:$0xff] }
  0x34   :  { %420 = vmatpush.msra.mxu1 %v274_v23  ;;  %464 = vmatpush.msra.mxu3 %v308_v24  ;;  %v367_v41 = vld [vmem:[%s1250_s2 + $0x378] sm:$0xff]  ;;  %v349_v42 = vld [vmem:[%s1250_s2 + $0x2e8] sm:$0xff]  ;;  %v304_v43 = vld [vmem:[%s1250_s2 + $0x180] sm:$0xff] }
  0x35   :  { %399 = vmatpush.msra.mxu0 %v256_v25  ;;  %443 = vmatpush.msra.mxu2 %v290_v26  ;;  %v331_v44 = vld [vmem:[%s1250_s2 + $0x258] sm:$0xff]  ;;  %v366_v45 = vld [vmem:[%s1250_s2 + $0x370] sm:$0xff]  ;;  %v348_v46 = vld [vmem:[%s1250_s2 + $0x2e0] sm:$0xff] }
  0x36   :  { %421 = vmatpush.msra.mxu1 %v273_v28  ;;  %465 = vmatpush.msra.mxu3 %v307_v30  ;;  %v383_v47 = vld [vmem:[%s1250_s2 + $0x3f8] sm:$0xff]  ;;  %v330_v48 = vld [vmem:[%s1250_s2 + $0x250] sm:$0xff]  ;;  %v365_v49 = vld [vmem:[%s1250_s2 + $0x368] sm:$0xff] }
  0x37   :  { %476 = vmatpush.msrb.mxu0 %v335_v29  ;;  %444 = vmatpush.msra.mxu2 %v289_v31  ;;  %v347_v50 = vld [vmem:[%s1250_s2 + $0x2d8] sm:$0xff]  ;;  %v382_v51 = vld [vmem:[%s1250_s2 + $0x3f0] sm:$0xff]  ;;  %v329_v52 = vld [vmem:[%s1250_s2 + $0x248] sm:$0xff] }
  0x38   :  { %422 = vmatpush.msra.mxu1 %v272_v32  ;;  %466 = vmatpush.msra.mxu3 %v306_v35  ;;  %v346_v53 = vld [vmem:[%s1250_s2 + $0x2d0] sm:$0xff]  ;;  %v364_v54 = vld [vmem:[%s1250_s2 + $0x360] sm:$0xff]  ;;  %v381_v55 = vld [vmem:[%s1250_s2 + $0x3e8] sm:$0xff] }
  0x39   :  { %477 = vmatpush.msrb.mxu0 %v334_v33  ;;  %445 = vmatpush.msra.mxu2 %v288_v37  ;;  %v328_v56 = vld [vmem:[%s1250_s2 + $0x240] sm:$0xff]  ;;  %v345_v57 = vld [vmem:[%s1250_s2 + $0x2c8] sm:$0xff]  ;;  %v363_v58 = vld [vmem:[%s1250_s2 + $0x358] sm:$0xff] }
  0x3a   :  { %499 = vmatpush.msrb.mxu1 %v351_v34  ;;  %467 = vmatpush.msra.mxu3 %v305_v39  ;;  %v380_v59 = vld [vmem:[%s1250_s2 + $0x3e0] sm:$0xff]  ;;  %v327_v60 = vld [vmem:[%s1250_s2 + $0x238] sm:$0xff]  ;;  %v362_v62 = vld [vmem:[%s1250_s2 + $0x350] sm:$0xff] }
  0x3b   :  { %478 = vmatpush.msrb.mxu0 %v333_v36  ;;  %522 = vmatpush.msrb.mxu2 %v367_v41  ;;  %v344_v61 = vld [vmem:[%s1250_s2 + $0x2c0] sm:$0xff]  ;;  %v379_v63 = vld [vmem:[%s1250_s2 + $0x3d8] sm:$0xff]  ;;  %v326_v0 = vld [vmem:[%s1250_s2 + $0x230] sm:$0xff] }
  0x3c   :  { %500 = vmatpush.msrb.mxu1 %v350_v38  ;;  %468 = vmatpush.msra.mxu3 %v304_v43  ;;  %v343_v1 = vld [vmem:[%s1250_s2 + $0x2b8] sm:$0xff]  ;;  %v361_v2 = vld [vmem:[%s1250_s2 + $0x348] sm:$0xff]  ;;  %v378_v3 = vld [vmem:[%s1250_s2 + $0x3d0] sm:$0xff] }
  0x3d   :  { %479 = vmatpush.msrb.mxu0 %v332_v40  ;;  %523 = vmatpush.msrb.mxu2 %v366_v45  ;;  %v325_v4 = vld [vmem:[%s1250_s2 + $0x228] sm:$0xff]  ;;  %v342_v5 = vld [vmem:[%s1250_s2 + $0x2b0] sm:$0xff]  ;;  %v360_v6 = vld [vmem:[%s1250_s2 + $0x340] sm:$0xff] }
  0x3e   :  { %501 = vmatpush.msrb.mxu1 %v349_v42  ;;  %545 = vmatpush.msrb.mxu3 %v383_v47  ;;  %v377_v7 = vld [vmem:[%s1250_s2 + $0x3c8] sm:$0xff]  ;;  %v324_v8 = vld [vmem:[%s1250_s2 + $0x220] sm:$0xff]  ;;  %v359_v10 = vld [vmem:[%s1250_s2 + $0x338] sm:$0xff] }
  0x3f   :  { %480 = vmatpush.msrb.mxu0 %v331_v44  ;;  %524 = vmatpush.msrb.mxu2 %v365_v49  ;;  %v341_v9 = vld [vmem:[%s1250_s2 + $0x2a8] sm:$0xff]  ;;  %v376_v11 = vld [vmem:[%s1250_s2 + $0x3c0] sm:$0xff]  ;;  %v323_v12 = vld [vmem:[%s1250_s2 + $0x218] sm:$0xff] }
  0x40   :  { %502 = vmatpush.msrb.mxu1 %v348_v46  ;;  %546 = vmatpush.msrb.mxu3 %v382_v51  ;;  %v340_v13 = vld [vmem:[%s1250_s2 + $0x2a0] sm:$0xff]  ;;  %v358_v15 = vld [vmem:[%s1250_s2 + $0x330] sm:$0xff]  ;;  %v375_v16 = vld [vmem:[%s1250_s2 + $0x3b8] sm:$0xff] }
  0x41   :  { %481 = vmatpush.msrb.mxu0 %v330_v48  ;;  %525 = vmatpush.msrb.mxu2 %v364_v54  ;;  %v322_v17 = vld [vmem:[%s1250_s2 + $0x210] sm:$0xff]  ;;  %v339_v18 = vld [vmem:[%s1250_s2 + $0x298] sm:$0xff]  ;;  %v357_v19 = vld [vmem:[%s1250_s2 + $0x328] sm:$0xff] }
  0x42   :  { %503 = vmatpush.msrb.mxu1 %v347_v50  ;;  %547 = vmatpush.msrb.mxu3 %v381_v55  ;;  %v374_v20 = vld [vmem:[%s1250_s2 + $0x3b0] sm:$0xff]  ;;  %v321_v21 = vld [vmem:[%s1250_s2 + $0x208] sm:$0xff]  ;;  %v356_v23 = vld [vmem:[%s1250_s2 + $0x320] sm:$0xff] }
  0x43   :  { %482 = vmatpush.msrb.mxu0 %v329_v52  ;;  %526 = vmatpush.msrb.mxu2 %v363_v58  ;;  %v338_v22 = vld [vmem:[%s1250_s2 + $0x290] sm:$0xff]  ;;  %v373_v24 = vld [vmem:[%s1250_s2 + $0x3a8] sm:$0xff]  ;;  %v320_v25 = vld [vmem:[%s1250_s2 + $0x200] sm:$0xff] }
  0x44   :  { %504 = vmatpush.msrb.mxu1 %v346_v53  ;;  %548 = vmatpush.msrb.mxu3 %v380_v59  ;;  %v337_v26 = vld [vmem:[%s1250_s2 + $0x288] sm:$0xff]  ;;  %v355_v28 = vld [vmem:[%s1250_s2 + $0x318] sm:$0xff]  ;;  %v372_v29 = vld [vmem:[%s1250_s2 + $0x3a0] sm:$0xff] }
  0x45   :  { %483 = vmatpush.msrb.mxu0 %v328_v56  ;;  %527 = vmatpush.msrb.mxu2 %v362_v62  ;;  %v336_v30 = vld [vmem:[%s1250_s2 + $0x280] sm:$0xff]  ;;  %v354_v31 = vld [vmem:[%s1250_s2 + $0x310] sm:$0xff]  ;;  %v371_v32 = vld [vmem:[%s1250_s2 + $0x398] sm:$0xff] }
  0x46   :  { %505 = vmatpush.msrb.mxu1 %v345_v57  ;;  %549 = vmatpush.msrb.mxu3 %v379_v63  ;;  %v353_v33 = vld [vmem:[%s1250_s2 + $0x308] sm:$0xff]  ;;  %v370_v34 = vld [vmem:[%s1250_s2 + $0x390] sm:$0xff]  ;;  %v352_v35 = vld [vmem:[%s1250_s2 + $0x300] sm:$0xff] }
  0x47   :  { %484 = vmatpush.msrb.mxu0 %v327_v60  ;;  %528 = vmatpush.msrb.mxu2 %v361_v2  ;;  %v369_v36 = vld [vmem:[%s1250_s2 + $0x388] sm:$0xff]  ;;  %v368_v37 = vld [vmem:[%s1250_s2 + $0x380] sm:$0xff]  ;;  %s692_s2 = smov [#allocation2]  }
  0x48   :  { %506 = vmatpush.msrb.mxu1 %v344_v61  ;;  %550 = vmatpush.msrb.mxu3 %v378_v3  ;;  %s625_s20 = sshll.u32 %s692_s2, 4  ;;  %s626_s20 = int_to_ptr.vmem [resolvable:$true] %s625_s20 }
  0x49   :  { %485 = vmatpush.msrb.mxu0 %v326_v0  ;;  %529 = vmatpush.msrb.mxu2 %v360_v6 }
  0x4a   :  { %507 = vmatpush.msrb.mxu1 %v343_v1  ;;  %551 = vmatpush.msrb.mxu3 %v377_v7 }
  0x4b   :  { %486 = vmatpush.msrb.mxu0 %v325_v4  ;;  %530 = vmatpush.msrb.mxu2 %v359_v10 }
  0x4c   :  { %508 = vmatpush.msrb.mxu1 %v342_v5  ;;  %552 = vmatpush.msrb.mxu3 %v376_v11 }
  0x4d   :  { %487 = vmatpush.msrb.mxu0 %v324_v8  ;;  %531 = vmatpush.msrb.mxu2 %v358_v15 }
  0x4e   :  { %509 = vmatpush.msrb.mxu1 %v341_v9  ;;  %553 = vmatpush.msrb.mxu3 %v375_v16 }
  0x4f   :  { %488 = vmatpush.msrb.mxu0 %v323_v12  ;;  %532 = vmatpush.msrb.mxu2 %v357_v19 }
  0x50   :  { %510 = vmatpush.msrb.mxu1 %v340_v13  ;;  %554 = vmatpush.msrb.mxu3 %v374_v20 }
  0x51   :  { %489 = vmatpush.msrb.mxu0 %v322_v17  ;;  %533 = vmatpush.msrb.mxu2 %v356_v23 }
  0x52   :  { %511 = vmatpush.msrb.mxu1 %v339_v18  ;;  %555 = vmatpush.msrb.mxu3 %v373_v24 }
  0x53   :  { %490 = vmatpush.msrb.mxu0 %v321_v21  ;;  %534 = vmatpush.msrb.mxu2 %v355_v28 }
  0x54   :  { %512 = vmatpush.msrb.mxu1 %v338_v22  ;;  %556 = vmatpush.msrb.mxu3 %v372_v29 }
  0x55   :  { %491 = vmatpush.msrb.mxu0 %v320_v25  ;;  %535 = vmatpush.msrb.mxu2 %v354_v31 }
  0x56   :  { %513 = vmatpush.msrb.mxu1 %v337_v26  ;;  %557 = vmatpush.msrb.mxu3 %v371_v32 }
  0x57   :  { %536 = vmatpush.msrb.mxu2 %v353_v33 }
  0x58   :  { %514 = vmatpush.msrb.mxu1 %v336_v30  ;;  %558 = vmatpush.msrb.mxu3 %v370_v34 }
  0x59   :  { %537 = vmatpush.msrb.mxu2 %v352_v35 }
  0x5a   :  { %559 = vmatpush.msrb.mxu3 %v369_v36 }
  0x5c   :  { %560 = vmatpush.msrb.mxu3 %v368_v37 }
  0x86   :  { %v73_v38 = vpop.f32.mrf.mxu0 }
  0x87   :  { %v240_v39 = vmax.f32 %v73_v38, 0.0 }
  0x88   :  { %v96_v40 = vpop.f32.mrf.mxu1 }
  0x89   :  { %v241_v41 = vmax.f32 %v96_v40, 0.0  ;;  %400 = vmatmul.f32.vlgmr.msra.gmra.mxu0 %v240_v39  ;;  %v691_v40 = vmov 32.0  }
  0x8a   :  { %659 = vrcp.f32 %v691_v40 }
  0x8b   :  { %423 = vmatmul.f32.vlgmr.msra.gmra.mxu1 %v241_v41 }
  0x8c   :  { %v119_v42 = vpop.f32.mrf.mxu2 }
  0x8d   :  { %v242_v43 = vmax.f32 %v119_v42, 0.0 }
  0x8e   :  { %v76_v44 = vpop.f32.mrf.mxu0 }
  0x8f   :  { %v248_v45 = vmax.f32 %v76_v44, 0.0  ;;  %v142_v46 = vpop.f32.mrf.mxu3  ;;  %446 = vmatmul.f32.vlgmr.msra.gmra.mxu2 %v242_v43 }
  0x90   :  { %v243_v47 = vmax.f32 %v142_v46, 0.0  ;;  %v99_v48 = vpop.f32.mrf.mxu1  ;;  %v660_v41 = vpop.eup %659 }
  0x91   :  { %v249_v49 = vmax.f32 %v99_v48, 0.0  ;;  %403 = vmatmul.f32.gmra.mxu0 %v248_v45  ;;  %v575_v42 = vmul.f32 32.0, %v660_v41  ;;  %vm579_vm1 = vweird.f32 %v660_v41 }
  0x92   :  { %469 = vmatmul.f32.vlgmr.msra.gmra.mxu3 %v243_v47 }
  0x93   :  { %426 = vmatmul.f32.gmra.mxu1 %v249_v49  ;;  %v576_v43 = vsub.f32 1.0, %v575_v42 }
  0x94   :  { %v122_v50 = vpop.f32.mrf.mxu2 }
  0x95   :  { %v250_v51 = vmax.f32 %v122_v50, 0.0  ;;  %v577_v44 = vmul.f32 %v660_v41, %v576_v43 }
  0x96   :  { %v165_v52 = vpop.f32.mrf.mxu0 }
  0x97   :  { %v145_v53 = vpop.f32.mrf.mxu3  ;;  %v244_v54 = vmax.f32 %v165_v52, 0.0  ;;  %449 = vmatmul.f32.gmra.mxu2 %v250_v51  ;;  %v578_v45 = vadd.f32 %v660_v41, %v577_v44 }
  0x98   :  { %v251_v55 = vmax.f32 %v145_v53, 0.0 }
  0x99   :  { %v188_v56 = vpop.f32.mrf.mxu1  ;;  %492 = vmatmul.f32.vlgmr.msrb.gmra.mxu0 %v244_v54  ;;  %v580_v46 = vsel %vm579_vm1, %v660_v41, %v578_v45 }
  0x9a   :  { %v245_v57 = vmax.f32 %v188_v56, 0.0  ;;  %472 = vmatmul.f32.gmra.mxu3 %v251_v55 }
  0x9c   :  { %515 = vmatmul.f32.vlgmr.msrb.gmra.mxu1 %v245_v57 }
  0x9d   :  { %v211_v58 = vpop.f32.mrf.mxu2 }
  0x9e   :  { %v246_v59 = vmax.f32 %v211_v58, 0.0 }
  0x9f   :  { %v168_v60 = vpop.f32.mrf.mxu0  ;;  %v234_v62 = vpop.f32.mrf.mxu3 }
  0xa0   :  { %v252_v61 = vmax.f32 %v168_v60, 0.0  ;;  %538 = vmatmul.f32.vlgmr.msrb.gmra.mxu2 %v246_v59  ;;  %v247_v63 = vmax.f32 %v234_v62, 0.0 }
  0xa1   :  { %v191_v0 = vpop.f32.mrf.mxu1 }
  0xa2   :  { %v253_v1 = vmax.f32 %v191_v0, 0.0  ;;  %495 = vmatmul.f32.gmra.mxu0 %v252_v61  ;;  %561 = vmatmul.f32.vlgmr.msrb.gmra.mxu3 %v247_v63 }
  0xa4   :  { %518 = vmatmul.f32.gmra.mxu1 %v253_v1 }
  0xa5   :  { %v214_v2 = vpop.f32.mrf.mxu2 }
  0xa6   :  { %v254_v3 = vmax.f32 %v214_v2, 0.0 }
  0xa7   :  { %v237_v4 = vpop.f32.mrf.mxu3 }
  0xa8   :  { %541 = vmatmul.f32.gmra.mxu2 %v254_v3  ;;  %v255_v5 = vmax.f32 %v237_v4, 0.0 }
  0xaa   :  { %564 = vmatmul.f32.gmra.mxu3 %v255_v5 }
 0x106   :  { %v401_v6 = vpop.f32.mrf.mxu0 }
 0x107   :  { %v402_v8 = vadd.f32 %v401_v6, %v760_v14 }
 0x108   :  { %v424_v7 = vpop.f32.mrf.mxu1 }
 0x109   :  { %v425_v10 = vadd.f32 %v424_v7, %v402_v8 }
 0x10e   :  { %v404_v9 = vpop.f32.mrf.mxu0 }
 0x10f   :  { %v405_v13 = vadd.f32 %v404_v9, %v809_v27 }
 0x110   :  { %v427_v11 = vpop.f32.mrf.mxu1 }
 0x111   :  { %v428_v18 = vadd.f32 %v427_v11, %v405_v13 }
 0x112   :  { %v447_v12 = vpop.f32.mrf.mxu2 }
 0x113   :  { %v448_v15 = vadd.f32 %v447_v12, %v425_v10 }
 0x115   :  { %v470_v16 = vpop.f32.mrf.mxu3 }
 0x116   :  { %v493_v17 = vpop.f32.mrf.mxu0  ;;  %v471_v19 = vadd.f32 %v470_v16, %v448_v15 }
 0x118   :  { %v494_v22 = vadd.f32 %v493_v17, %v471_v19 }
 0x119   :  { %v516_v21 = vpop.f32.mrf.mxu1 }
 0x11a   :  { %v450_v20 = vpop.f32.mrf.mxu2  ;;  %v517_v25 = vadd.f32 %v516_v21, %v494_v22 }
 0x11b   :  { %v451_v23 = vadd.f32 %v450_v20, %v428_v18 }
 0x11d   :  { %v473_v24 = vpop.f32.mrf.mxu3 }
 0x11e   :  { %v474_v26 = vadd.f32 %v473_v24, %v451_v23 }
 0x11f   :  { %v496_v28 = vpop.f32.mrf.mxu0 }
 0x120   :  { %v497_v30 = vadd.f32 %v496_v28, %v474_v26 }
 0x121   :  { %v519_v32 = vpop.f32.mrf.mxu1 }
 0x122   :  { %v520_v34 = vadd.f32 %v519_v32, %v497_v30 }
 0x123   :  { %v539_v14 = vpop.f32.mrf.mxu2 }
 0x124   :  { %v540_v29 = vadd.f32 %v539_v14, %v517_v25 }
 0x125   :  { %v562_v31 = vpop.f32.mrf.mxu3 }
 0x126   :  { %v563_v33 = vadd.f32 %v562_v31, %v540_v29 }
 0x128   :  { %v568_v27 = vsel %vm49_vm0, %v563_v33, 0.0 }
 0x129   :  { %569 = vadd.xlane.f32.xlu0 %v568_v27 }
 0x12b   :  { %v542_v35 = vpop.f32.mrf.mxu2 }
 0x12c   :  { %v543_v36 = vadd.f32 %v542_v35, %v520_v34 }
 0x12d   :  { %v565_v37 = vpop.f32.mrf.mxu3 }
 0x12e   :  { %v566_v38 = vadd.f32 %v565_v37, %v543_v36 }
 0x130   :  { %v571_v39 = vsel %vm49_vm0, %v566_v38, 0.0 }
 0x131   :  { %572 = vadd.xlane.f32.xlu0 %v571_v39 }
 0x19c   :  { %v570_v47 = vpop.xlane.xlu0 %569 }
 0x19d   :  { %v581_v48 = vmul.f32 %v580_v46, %v570_v47 }
 0x19f   :  { %v583_v49 = vsub.f32 %v563_v33, %v581_v48 }
 0x1a1   :  { %v585_v50 = vmul.f32 %v583_v49, %v583_v49 }
 0x1a3   :  { %v587_v51 = vsel %vm49_vm0, %v585_v50, 0.0 }
 0x1a4   :  { %588 = vadd.xlane.f32.xlu1 %v587_v51  ;;  %v573_v52 = vpop.xlane.xlu0 %572 }
 0x1a5   :  { %v582_v53 = vmul.f32 %v580_v46, %v573_v52 }
 0x1a7   :  { %v584_v54 = vsub.f32 %v566_v38, %v582_v53 }
 0x1a9   :  { %v586_v55 = vmul.f32 %v584_v54, %v584_v54 }
 0x1ab   :  { %v590_v56 = vsel %vm49_vm0, %v586_v55, 0.0 }
 0x1ac   :  { %591 = vadd.xlane.f32.xlu1 %v590_v56 }
 0x217   :  { %v589_v57 = vpop.xlane.xlu1 %588 }
 0x218   :  { %v593_v58 = vmul.f32 %v589_v57, %v580_v46 }
 0x21a   :  { %v595_v59 = vadd.f32 1e-05, %v593_v58 }
 0x21c   :  { %661 = vrsqrt.f32 %v595_v59  ;;  %vm603_vm3 = vweird.f32 %v595_v59 }
 0x21f   :  { %v592_v60 = vpop.xlane.xlu1 %591 }
 0x220   :  { %v594_v61 = vmul.f32 %v592_v60, %v580_v46 }
 0x222   :  { %v662_v62 = vpop.eup %661  ;;  %v596_v63 = vadd.f32 1e-05, %v594_v61 }
 0x223   :  { %v598_v0 = vmul.f32 %v662_v62, %v595_v59  ;;  %vm604_vm2 = vweird.f32 %v662_v62 }
 0x224   :  { %663 = vrsqrt.f32 %v596_v63  ;;  %vm605_vm4 = vmor %vm603_vm3, %vm604_vm2  ;;  %vm613_vm6 = vweird.f32 %v596_v63 }
 0x225   :  { %v599_v1 = vmul.f32 %v662_v62, %v598_v0 }
 0x227   :  { %v600_v2 = vmul.f32 0.5, %v599_v1 }
 0x229   :  { %v601_v3 = vsub.f32 1.5, %v600_v2 }
 0x22a   :  { %v664_v4 = vpop.eup %663 }
 0x22b   :  { %v602_v5 = vmul.f32 %v662_v62, %v601_v3  ;;  %v608_v6 = vmul.f32 %v664_v4, %v596_v63  ;;  %vm614_vm5 = vweird.f32 %v664_v4 }
 0x22c   :  { %vm615_vm7 = vmor %vm613_vm6, %vm614_vm5 }
 0x22d   :  { %v606_v7 = vsel %vm605_vm4, %v662_v62, %v602_v5  ;;  %v609_v8 = vmul.f32 %v664_v4, %v608_v6 }
 0x22e   :  { %v617_v9 = vmul.f32 %v606_v7, %v583_v49 }
 0x22f   :  { %v610_v10 = vmul.f32 0.5, %v609_v8 }
 0x230   :  { %619 = vst.msk [vmem:[#allocation2] sm:$0xff] %vm49_vm0, %v617_v9 }
 0x231   :  { %v611_v11 = vsub.f32 1.5, %v610_v10 }
 0x233   :  { %v612_v12 = vmul.f32 %v664_v4, %v611_v11 }
 0x235   :  { %v616_v13 = vsel %vm615_vm7, %v664_v4, %v612_v12 }
 0x236   :  { %v618_v15 = vmul.f32 %v616_v13, %v584_v54 }
 0x238   :  { %620 = vst.msk [vmem:[#allocation2 + $0x8] sm:$0xff] %vm49_vm0, %v618_v15 }
 0x239   :  { %633 = dma.vmem_to_hbm [thread:$0]  %s626_s20, 256, %s628_s23, [#allocation3], %s693_s24, %s693_s24, %s694_s25  }
 0x23a   :  { %689 = dma.done.wait [#allocation3], 256  }
 0x23b   :  { %690 = vsyncadd [#allocation3], 4294967040 }
 0x23c   :  { %638 = vsyncpa [#allocation3], 1 }

</bundles_post_ra>
